<compile_context>
chip_gen: v7x
topology: tpu7x:2x2x1
jax: 0.10.0
libtpu: 0.0.40
codegen_flags: <defaults>
</compile_context>

<pallas_src>
import functools

import jax
import jax.numpy as jnp
import numpy as np
from jax.experimental import pallas as pl
from jax.experimental.pallas import tpu as pltpu


# ---------------------------------------------------------------------------
# Kernels
# ---------------------------------------------------------------------------
def _tsm_clip_kernel(x_ref, wl_ref, wm_ref, wr_ref, b_ref, o_ref, *, fold, T):
    """Whole-clip block: x_ref (1, T, C, HWt) -> o_ref (1, T, Cout, HWt).

    wl_ref: (Cout, fold)        weight columns [0, fold)        (bf16)
    wm_ref: (Cout, fold)        weight columns [fold, 2*fold)   (bf16)
    wr_ref: (Cout, C-2*fold)    weight columns [2*fold, C)      (bf16)
    b_ref : (Cout, 1)           bias (f32)
    """
    wl = wl_ref[...]
    wm = wm_ref[...]
    wr = wr_ref[...]
    bias = b_ref[...]
    cdt = wr.dtype
    for t in range(T):                       # T is small & static -> unrolled
        cur_rest = x_ref[0, t, 2 * fold:]    # (C-2*fold, HWt), untouched chans
        acc = jnp.dot(wr, cur_rest.astype(cdt),
                      preferred_element_type=jnp.float32)
        if t + 1 < T:                        # left shift: chans [0,fold) <- t+1
            nxt = x_ref[0, t + 1, :fold]
            acc = acc + jnp.dot(wl, nxt.astype(cdt),
                                preferred_element_type=jnp.float32)
        # (t == T-1: shifted-in frame is zero -> dot skipped entirely)
        if t > 0:                            # right shift: [fold,2fold) <- t-1
            prv = x_ref[0, t - 1, fold:2 * fold]
            acc = acc + jnp.dot(wm, prv.astype(cdt),
                                preferred_element_type=jnp.float32)
        o_ref[0, t] = (acc + bias).astype(o_ref.dtype)


def _tsm_frame_kernel(x_next_ref, x_prev_ref, x_cur_ref, wl_ref, wm_ref,
                      wr_ref, b_ref, o_ref, *, fold, narrow):
    """Per-frame fallback: one (clip, frame, hw-tile) block per grid step."""
    t = pl.program_id(1)
    T = pl.num_programs(1)

    wl = wl_ref[...]
    wm = wm_ref[...]
    wr = wr_ref[...]
    cdt = wr.dtype

    cur_rest = x_cur_ref[0, 0, 2 * fold:]        # (C-2*fold, HWt)
    nxt = x_next_ref[0, 0]                       # (fold, HWt) or (C, HWt)
    prv = x_prev_ref[0, 0]
    if not narrow:                               # fallback: slice in-kernel
        nxt = nxt[:fold]
        prv = prv[fold:2 * fold]

    # zero-mask clamped edge frames (matches the `blank` cat in PyTorch)
    nxt = jnp.where(t == T - 1, jnp.zeros_like(nxt), nxt)
    prv = jnp.where(t == 0, jnp.zeros_like(prv), prv)

    acc = jnp.dot(wr, cur_rest.astype(cdt), preferred_element_type=jnp.float32)
    acc = acc + jnp.dot(wl, nxt.astype(cdt), preferred_element_type=jnp.float32)
    acc = acc + jnp.dot(wm, prv.astype(cdt), preferred_element_type=jnp.float32)
    o_ref[0, 0] = (acc + b_ref[...]).astype(o_ref.dtype)


# ---------------------------------------------------------------------------
# Wrapper
# ---------------------------------------------------------------------------
def _vmem_budget():
    """Generation-aware VMEM budget (bytes usable by this kernel)."""
    try:
        cap = int(pltpu.get_tpu_info().vmem_capacity_bytes)
    except Exception:
        cap = 64 << 20          # conservative default (v7x per-core VMEM)
    return int(cap * 3 // 4)


def _pick_hw_tile(hw_pad, need_fn, budget, requested=None):
    """Largest lane-dense tile (multiple of 128 dividing hw_pad) within budget."""
    if requested is not None:
        assert requested % 128 == 0 and hw_pad % requested == 0
        return requested
    for k in range(hw_pad // 128, 0, -1):
        tile = k * 128
        if hw_pad % tile == 0 and need_fn(tile) <= budget:
            return tile
    return 128


def temporal_shift_conv1x1(x_nchw, weight_oc, bias_o, *, num_clips=8,
                           shift_div=8, hw_tile=None, force_frame_mode=False):
    """x_nchw: (NT, Cin, H, W); weight_oc: (Cout, Cin); bias_o: (Cout,)."""
    nt, c, h, w = x_nchw.shape
    assert nt % num_clips == 0
    b = nt // num_clips
    T = num_clips
    hw = h * w
    fold = c // shift_div
    assert fold >= 1 and 2 * fold <= c, "need c // shift_div >= 1 and shift_div >= 2"
    cout, cin = weight_oc.shape
    assert cin == c
    in_dtype = x_nchw.dtype
    itemsize = jnp.dtype(in_dtype).itemsize

    # Lane-dense spatial axis: real TSM sizes (49/196/784/3136) are not
    # 128-multiples, so pad HW once in the wrapper (unmasked vst in-kernel).
    hw_pad = ((hw + 127) // 128) * 128
    x = x_nchw.reshape(b, T, c, hw)              # pure reshape, no data movement
    if hw_pad != hw:
        x = jnp.pad(x, ((0, 0), (0, 0), (0, 0), (0, hw_pad - hw)))

    # MXU-native operands: weight pre-split at the shift boundaries, bf16.
    compute_dtype = jnp.bfloat16
    w_left = weight_oc[:, :fold].astype(compute_dtype)
    w_mid = weight_oc[:, fold:2 * fold].astype(compute_dtype)
    w_rest = weight_oc[:, 2 * fold:].astype(compute_dtype)
    bias2 = bias_o.astype(jnp.float32).reshape(cout, 1)

    budget = _vmem_budget()
    # weights/bias are resident but assume the pipeline double-buffers them too
    w_bytes = 2 * (cout * c * jnp.dtype(compute_dtype).itemsize + cout * 4)

    def clip_need(tile):
        blk = T * (c + cout) * tile * itemsize
        return 2 * blk + w_bytes + 2 * cout * tile * 4      # + f32 acc headroom

    def frame_need(tile, nb_c):
        blk = (c + 2 * nb_c + cout) * tile * itemsize
        return 2 * blk + w_bytes + 2 * cout * tile * 4

    cost = pl.CostEstimate(
        flops=2 * b * T * cout * c * hw_pad,
        transcendentals=0,
        bytes_accessed=(b * T * (c + cout) * hw_pad + cout * c) * itemsize)

    use_clip = not force_frame_mode
    if use_clip:
        tile = _pick_hw_tile(hw_pad, clip_need, budget, hw_tile)
        if clip_need(tile) > budget:
            use_clip = False

    if use_clip:
        n_hw = hw_pad // tile
        kernel = functools.partial(_tsm_clip_kernel, fold=fold, T=T)
        grid = (b, n_hw)
        in_specs = [
            pl.BlockSpec((1, T, c, tile), lambda bi, hi: (bi, 0, 0, hi)),
            pl.BlockSpec((cout, fold), lambda bi, hi: (0, 0)),
            pl.BlockSpec((cout, fold), lambda bi, hi: (0, 0)),
            pl.BlockSpec((cout, c - 2 * fold), lambda bi, hi: (0, 0)),
            pl.BlockSpec((cout, 1), lambda bi, hi: (0, 0)),
        ]
        out_spec = pl.BlockSpec((1, T, cout, tile),
                                lambda bi, hi: (bi, 0, 0, hi))
        operands = (x, w_left, w_mid, w_rest, bias2)
        dims = ("parallel", "parallel")
        need = clip_need(tile)
    else:
        # dtype-aware sublane packing for narrow neighbour blocks:
        # 8 (f32), 16 (bf16), 32 (int8)
        pack = 32 // itemsize
        narrow = (fold % pack == 0) and (2 * fold <= c)
        nb_c = fold if narrow else c
        tile = _pick_hw_tile(hw_pad, lambda t_: frame_need(t_, nb_c), budget,
                             hw_tile)
        n_hw = hw_pad // tile
        kernel = functools.partial(_tsm_frame_kernel, fold=fold, narrow=narrow)
        grid = (b, T, n_hw)
        next_spec = pl.BlockSpec(
            (1, 1, nb_c, tile),
            lambda bi, ti, hi: (bi, jnp.minimum(ti + 1, T - 1), 0, hi))
        prev_spec = pl.BlockSpec(
            (1, 1, nb_c, tile),
            lambda bi, ti, hi: (bi, jnp.maximum(ti - 1, 0),
                                1 if narrow else 0, hi))
        cur_spec = pl.BlockSpec((1, 1, c, tile),
                                lambda bi, ti, hi: (bi, ti, 0, hi))
        in_specs = [
            next_spec, prev_spec, cur_spec,
            pl.BlockSpec((cout, fold), lambda bi, ti, hi: (0, 0)),
            pl.BlockSpec((cout, fold), lambda bi, ti, hi: (0, 0)),
            pl.BlockSpec((cout, c - 2 * fold), lambda bi, ti, hi: (0, 0)),
            pl.BlockSpec((cout, 1), lambda bi, ti, hi: (0, 0)),
        ]
        out_spec = pl.BlockSpec((1, 1, cout, tile),
                                lambda bi, ti, hi: (bi, ti, 0, hi))
        operands = (x, x, x, w_left, w_mid, w_rest, bias2)
        dims = ("parallel", "parallel", "parallel")
        need = frame_need(tile, nb_c)

    vmem_limit = int(min(max(need * 3 // 2, 32 << 20), budget))

    out = pl.pallas_call(
        kernel,
        out_shape=jax.ShapeDtypeStruct((b, T, cout, hw_pad), in_dtype),
        grid_spec=pltpu.PrefetchScalarGridSpec(
            num_scalar_prefetch=0,
            grid=grid,
            in_specs=in_specs,
            out_specs=out_spec),
        compiler_params=pltpu.CompilerParams(
            dimension_semantics=dims,
            vmem_limit_bytes=vmem_limit),
        cost_estimate=cost,
    )(*operands)

    if hw_pad != hw:
        out = out[..., :hw]
    # (B, T, Cout, HW) -> (NT, Cout, H, W): pure reshape, no transpose.
    return out.reshape(nt, cout, h, w)


# ---------------------------------------------------------------------------
# Pure-JAX reference (mirrors the PyTorch module) for correctness checks.
# ---------------------------------------------------------------------------
def _shift_ref(x, num_clips, shift_div):
    nt, c, h, w = x.shape
    b = nt // num_clips
    xr = x.reshape(b, num_clips, c, h * w)
    fold = c // shift_div
    left = xr[:, :, :fold, :]
    mid = xr[:, :, fold:2 * fold, :]
    right = xr[:, :, 2 * fold:, :]
    left = jnp.concatenate([left[:, 1:], jnp.zeros_like(left[:, :1])], axis=1)
    mid = jnp.concatenate([jnp.zeros_like(mid[:, :1]), mid[:, :-1]], axis=1)
    out = jnp.concatenate([left, mid, right], axis=2)
    return out.reshape(nt, c, h, w)


def _forward_ref(x, weight_oc, bias_o, num_clips, shift_div):
    shifted = _shift_ref(x, num_clips, shift_div)
    y = jnp.einsum('nchw,oc->nohw', shifted, weight_oc)
    return y + bias_o[None, :, None, None]


if __name__ == "__main__":
    num_clips = 8
    shift_div = 8
    batch = 2
    c = 64            # fold = 8
    h = wdt = 16      # hw = 256 (already a 128-lane multiple)
    nt = batch * num_clips

    key = jax.random.PRNGKey(0)
    kx, kw, kb = jax.random.split(key, 3)
    x = jax.random.normal(kx, (nt, c, h, wdt), dtype=jnp.float32)
    # "net" = deterministic 1x1 Conv2d(c -> c) with bias (synthetic weights).
    weight = jax.random.normal(kw, (c, c), dtype=jnp.float32) * 0.1
    bias = jax.random.normal(kb, (c,), dtype=jnp.float32) * 0.01

    ref = _forward_ref(x, weight, bias, num_clips, shift_div)

    # Fast path: whole clip per grid step, auto hw tile (bf16 MXU, f32 acc).
    out = temporal_shift_conv1x1(x, weight, bias, num_clips=num_clips,
                                 shift_div=shift_div)
    out = jax.block_until_ready(out)
    np.testing.assert_allclose(np.asarray(out), np.asarray(ref),
                               rtol=2e-2, atol=2e-2)

    # Fallback path: per-frame grid, narrow neighbour reads, hw tiling.
    out2 = temporal_shift_conv1x1(x, weight, bias, num_clips=num_clips,
                                  shift_div=shift_div, hw_tile=128,
                                  force_frame_mode=True)
    out2 = jax.block_until_ready(out2)
    np.testing.assert_allclose(np.asarray(out2), np.asarray(ref),
                               rtol=2e-2, atol=2e-2)

    print("KERNEL_OK")
</pallas_src>

<mosaic_0001>
module attributes {stable_mosaic.version = 11 : i64} {
  func.func @_tsm_clip_kernel(%arg0: i32, %arg1: i32, %arg2: memref<1x8x64x256xf32, #tpu.memory_space<vmem>>, %arg3: memref<64x8xbf16, #tpu.memory_space<vmem>>, %arg4: memref<64x8xbf16, #tpu.memory_space<vmem>>, %arg5: memref<64x48xbf16, #tpu.memory_space<vmem>>, %arg6: memref<64x1xf32, #tpu.memory_space<vmem>>, %arg7: memref<1x8x64x256xf32, #tpu.memory_space<vmem>>) attributes {dimension_semantics = [#tpu.dimension_semantics<parallel>, #tpu.dimension_semantics<parallel>], iteration_bounds = array<i64: 2, 1>, scalar_prefetch = 0 : i64, scratch_operands = 0 : i64, tpu.core_type = #tpu.core_type<tc>, window_params = [{transform_indices = @transform_0, window_bounds = array<i64: 1, 8, 64, 256>}, {pipeline_mode = #tpu.pipeline_mode<synchronous>, transform_indices = @transform_1, window_bounds = array<i64: 64, 8>}, {pipeline_mode = #tpu.pipeline_mode<synchronous>, transform_indices = @transform_2, window_bounds = array<i64: 64, 8>}, {pipeline_mode = #tpu.pipeline_mode<synchronous>, transform_indices = @transform_3, window_bounds = array<i64: 64, 48>}, {pipeline_mode = #tpu.pipeline_mode<synchronous>, transform_indices = @transform_4, window_bounds = array<i64: 64, 1>}, {transform_indices = @transform_5, window_bounds = array<i64: 1, 8, 64, 256>}]} {
    %c0 = arith.constant 0 : index
    %c0_0 = arith.constant 0 : index
    %0 = vector.load %arg3[%c0, %c0_0] : memref<64x8xbf16, #tpu.memory_space<vmem>>, vector<64x8xbf16>
    %c0_1 = arith.constant 0 : index
    %c0_2 = arith.constant 0 : index
    %1 = vector.load %arg4[%c0_1, %c0_2] : memref<64x8xbf16, #tpu.memory_space<vmem>>, vector<64x8xbf16>
    %c0_3 = arith.constant 0 : index
    %c0_4 = arith.constant 0 : index
    %2 = vector.load %arg5[%c0_3, %c0_4] : memref<64x48xbf16, #tpu.memory_space<vmem>>, vector<64x48xbf16>
    %c0_5 = arith.constant 0 : index
    %c0_6 = arith.constant 0 : index
    %3 = vector.load %arg6[%c0_5, %c0_6] : memref<64x1xf32, #tpu.memory_space<vmem>>, vector<64x1xf32>
    %c0_7 = arith.constant 0 : index
    %c0_8 = arith.constant 0 : index
    %c16 = arith.constant 16 : index
    %c0_9 = arith.constant 0 : index
    %4 = vector.load %arg2[%c0_7, %c0_8, %c16, %c0_9] : memref<1x8x64x256xf32, #tpu.memory_space<vmem>>, vector<1x1x48x256xf32>
    %5 = vector.shape_cast %4 : vector<1x1x48x256xf32> to vector<48x256xf32>
    %6 = arith.truncf %5 : vector<48x256xf32> to vector<48x256xbf16>
    %cst = arith.constant dense<0.000000e+00> : vector<64x256xf32>
    %7 = tpu.matmul %2, %6, %cst {dimension_numbers = #tpu.dot_dimension_numbers<[1], [0], [0], [1], [0, 0, 1, 1], [], []>} : vector<64x48xbf16>, vector<48x256xbf16>, vector<64x256xf32> -> vector<64x256xf32>
    %c0_10 = arith.constant 0 : index
    %c1 = arith.constant 1 : index
    %c0_11 = arith.constant 0 : index
    %c0_12 = arith.constant 0 : index
    %8 = vector.load %arg2[%c0_10, %c1, %c0_11, %c0_12] : memref<1x8x64x256xf32, #tpu.memory_space<vmem>>, vector<1x1x8x256xf32>
    %9 = vector.shape_cast %8 : vector<1x1x8x256xf32> to vector<8x256xf32>
    %10 = arith.truncf %9 : vector<8x256xf32> to vector<8x256xbf16>
    %cst_13 = arith.constant dense<0.000000e+00> : vector<64x256xf32>
    %11 = tpu.matmul %0, %10, %cst_13 {dimension_numbers = #tpu.dot_dimension_numbers<[1], [0], [0], [1], [0, 0, 1, 1], [], []>} : vector<64x8xbf16>, vector<8x256xbf16>, vector<64x256xf32> -> vector<64x256xf32>
    %12 = arith.addf %7, %11 : vector<64x256xf32>
    %13 = vector.broadcast %3 : vector<64x1xf32> to vector<64x256xf32>
    %14 = arith.addf %12, %13 : vector<64x256xf32>
    %c0_14 = arith.constant 0 : index
    %c0_15 = arith.constant 0 : index
    %c0_16 = arith.constant 0 : index
    %c0_17 = arith.constant 0 : index
    %15 = vector.load %arg7[%c0_14, %c0_15, %c0_16, %c0_17] : memref<1x8x64x256xf32, #tpu.memory_space<vmem>>, vector<1x1x64x256xf32>
    %16 = vector.shape_cast %15 : vector<1x1x64x256xf32> to vector<64x256xf32>
    %17 = vector.shape_cast %14 : vector<64x256xf32> to vector<1x1x64x256xf32>
    tpu.vector_store %arg7[%c0_14, %c0_15, %c0_16, %c0_17], %17 {strides = array<i32>} : memref<1x8x64x256xf32, #tpu.memory_space<vmem>>, vector<1x1x64x256xf32>,
    %c0_18 = arith.constant 0 : index
    %c1_19 = arith.constant 1 : index
    %c16_20 = arith.constant 16 : index
    %c0_21 = arith.constant 0 : index
    %18 = vector.load %arg2[%c0_18, %c1_19, %c16_20, %c0_21] : memref<1x8x64x256xf32, #tpu.memory_space<vmem>>, vector<1x1x48x256xf32>
    %19 = vector.shape_cast %18 : vector<1x1x48x256xf32> to vector<48x256xf32>
    %20 = arith.truncf %19 : vector<48x256xf32> to vector<48x256xbf16>
    %cst_22 = arith.constant dense<0.000000e+00> : vector<64x256xf32>
    %21 = tpu.matmul %2, %20, %cst_22 {dimension_numbers = #tpu.dot_dimension_numbers<[1], [0], [0], [1], [0, 0, 1, 1], [], []>} : vector<64x48xbf16>, vector<48x256xbf16>, vector<64x256xf32> -> vector<64x256xf32>
    %c0_23 = arith.constant 0 : index
    %c2 = arith.constant 2 : index
    %c0_24 = arith.constant 0 : index
    %c0_25 = arith.constant 0 : index
    %22 = vector.load %arg2[%c0_23, %c2, %c0_24, %c0_25] : memref<1x8x64x256xf32, #tpu.memory_space<vmem>>, vector<1x1x8x256xf32>
    %23 = vector.shape_cast %22 : vector<1x1x8x256xf32> to vector<8x256xf32>
    %24 = arith.truncf %23 : vector<8x256xf32> to vector<8x256xbf16>
    %cst_26 = arith.constant dense<0.000000e+00> : vector<64x256xf32>
    %25 = tpu.matmul %0, %24, %cst_26 {dimension_numbers = #tpu.dot_dimension_numbers<[1], [0], [0], [1], [0, 0, 1, 1], [], []>} : vector<64x8xbf16>, vector<8x256xbf16>, vector<64x256xf32> -> vector<64x256xf32>
    %26 = arith.addf %21, %25 : vector<64x256xf32>
    %c0_27 = arith.constant 0 : index
    %c0_28 = arith.constant 0 : index
    %c8 = arith.constant 8 : index
    %c0_29 = arith.constant 0 : index
    %27 = vector.load %arg2[%c0_27, %c0_28, %c8, %c0_29] : memref<1x8x64x256xf32, #tpu.memory_space<vmem>>, vector<1x1x8x256xf32>
    %28 = vector.shape_cast %27 : vector<1x1x8x256xf32> to vector<8x256xf32>
    %29 = arith.truncf %28 : vector<8x256xf32> to vector<8x256xbf16>
    %cst_30 = arith.constant dense<0.000000e+00> : vector<64x256xf32>
    %30 = tpu.matmul %1, %29, %cst_30 {dimension_numbers = #tpu.dot_dimension_numbers<[1], [0], [0], [1], [0, 0, 1, 1], [], []>} : vector<64x8xbf16>, vector<8x256xbf16>, vector<64x256xf32> -> vector<64x256xf32>
    %31 = arith.addf %26, %30 : vector<64x256xf32>
    %32 = vector.broadcast %3 : vector<64x1xf32> to vector<64x256xf32>
    %33 = arith.addf %31, %32 : vector<64x256xf32>
    %c0_31 = arith.constant 0 : index
    %c1_32 = arith.constant 1 : index
    %c0_33 = arith.constant 0 : index
    %c0_34 = arith.constant 0 : index
    %34 = vector.load %arg7[%c0_31, %c1_32, %c0_33, %c0_34] : memref<1x8x64x256xf32, #tpu.memory_space<vmem>>, vector<1x1x64x256xf32>
    %35 = vector.shape_cast %34 : vector<1x1x64x256xf32> to vector<64x256xf32>
    %36 = vector.shape_cast %33 : vector<64x256xf32> to vector<1x1x64x256xf32>
    tpu.vector_store %arg7[%c0_31, %c1_32, %c0_33, %c0_34], %36 {strides = array<i32>} : memref<1x8x64x256xf32, #tpu.memory_space<vmem>>, vector<1x1x64x256xf32>,
    %c0_35 = arith.constant 0 : index
    %c2_36 = arith.constant 2 : index
    %c16_37 = arith.constant 16 : index
    %c0_38 = arith.constant 0 : index
    %37 = vector.load %arg2[%c0_35, %c2_36, %c16_37, %c0_38] : memref<1x8x64x256xf32, #tpu.memory_space<vmem>>, vector<1x1x48x256xf32>
    %38 = vector.shape_cast %37 : vector<1x1x48x256xf32> to vector<48x256xf32>
    %39 = arith.truncf %38 : vector<48x256xf32> to vector<48x256xbf16>
    %cst_39 = arith.constant dense<0.000000e+00> : vector<64x256xf32>
    %40 = tpu.matmul %2, %39, %cst_39 {dimension_numbers = #tpu.dot_dimension_numbers<[1], [0], [0], [1], [0, 0, 1, 1], [], []>} : vector<64x48xbf16>, vector<48x256xbf16>, vector<64x256xf32> -> vector<64x256xf32>
    %c0_40 = arith.constant 0 : index
    %c3 = arith.constant 3 : index
    %c0_41 = arith.constant 0 : index
    %c0_42 = arith.constant 0 : index
    %41 = vector.load %arg2[%c0_40, %c3, %c0_41, %c0_42] : memref<1x8x64x256xf32, #tpu.memory_space<vmem>>, vector<1x1x8x256xf32>
    %42 = vector.shape_cast %41 : vector<1x1x8x256xf32> to vector<8x256xf32>
    %43 = arith.truncf %42 : vector<8x256xf32> to vector<8x256xbf16>
    %cst_43 = arith.constant dense<0.000000e+00> : vector<64x256xf32>
    %44 = tpu.matmul %0, %43, %cst_43 {dimension_numbers = #tpu.dot_dimension_numbers<[1], [0], [0], [1], [0, 0, 1, 1], [], []>} : vector<64x8xbf16>, vector<8x256xbf16>, vector<64x256xf32> -> vector<64x256xf32>
    %45 = arith.addf %40, %44 : vector<64x256xf32>
    %c0_44 = arith.constant 0 : index
    %c1_45 = arith.constant 1 : index
    %c8_46 = arith.constant 8 : index
    %c0_47 = arith.constant 0 : index
    %46 = vector.load %arg2[%c0_44, %c1_45, %c8_46, %c0_47] : memref<1x8x64x256xf32, #tpu.memory_space<vmem>>, vector<1x1x8x256xf32>
    %47 = vector.shape_cast %46 : vector<1x1x8x256xf32> to vector<8x256xf32>
    %48 = arith.truncf %47 : vector<8x256xf32> to vector<8x256xbf16>
    %cst_48 = arith.constant dense<0.000000e+00> : vector<64x256xf32>
    %49 = tpu.matmul %1, %48, %cst_48 {dimension_numbers = #tpu.dot_dimension_numbers<[1], [0], [0], [1], [0, 0, 1, 1], [], []>} : vector<64x8xbf16>, vector<8x256xbf16>, vector<64x256xf32> -> vector<64x256xf32>
    %50 = arith.addf %45, %49 : vector<64x256xf32>
    %51 = vector.broadcast %3 : vector<64x1xf32> to vector<64x256xf32>
    %52 = arith.addf %50, %51 : vector<64x256xf32>
    %c0_49 = arith.constant 0 : index
    %c2_50 = arith.constant 2 : index
    %c0_51 = arith.constant 0 : index
    %c0_52 = arith.constant 0 : index
    %53 = vector.load %arg7[%c0_49, %c2_50, %c0_51, %c0_52] : memref<1x8x64x256xf32, #tpu.memory_space<vmem>>, vector<1x1x64x256xf32>
    %54 = vector.shape_cast %53 : vector<1x1x64x256xf32> to vector<64x256xf32>
    %55 = vector.shape_cast %52 : vector<64x256xf32> to vector<1x1x64x256xf32>
    tpu.vector_store %arg7[%c0_49, %c2_50, %c0_51, %c0_52], %55 {strides = array<i32>} : memref<1x8x64x256xf32, #tpu.memory_space<vmem>>, vector<1x1x64x256xf32>,
    %c0_53 = arith.constant 0 : index
    %c3_54 = arith.constant 3 : index
    %c16_55 = arith.constant 16 : index
    %c0_56 = arith.constant 0 : index
    %56 = vector.load %arg2[%c0_53, %c3_54, %c16_55, %c0_56] : memref<1x8x64x256xf32, #tpu.memory_space<vmem>>, vector<1x1x48x256xf32>
    %57 = vector.shape_cast %56 : vector<1x1x48x256xf32> to vector<48x256xf32>
    %58 = arith.truncf %57 : vector<48x256xf32> to vector<48x256xbf16>
    %cst_57 = arith.constant dense<0.000000e+00> : vector<64x256xf32>
    %59 = tpu.matmul %2, %58, %cst_57 {dimension_numbers = #tpu.dot_dimension_numbers<[1], [0], [0], [1], [0, 0, 1, 1], [], []>} : vector<64x48xbf16>, vector<48x256xbf16>, vector<64x256xf32> -> vector<64x256xf32>
    %c0_58 = arith.constant 0 : index
    %c4 = arith.constant 4 : index
    %c0_59 = arith.constant 0 : index
    %c0_60 = arith.constant 0 : index
    %60 = vector.load %arg2[%c0_58, %c4, %c0_59, %c0_60] : memref<1x8x64x256xf32, #tpu.memory_space<vmem>>, vector<1x1x8x256xf32>
    %61 = vector.shape_cast %60 : vector<1x1x8x256xf32> to vector<8x256xf32>
    %62 = arith.truncf %61 : vector<8x256xf32> to vector<8x256xbf16>
    %cst_61 = arith.constant dense<0.000000e+00> : vector<64x256xf32>
    %63 = tpu.matmul %0, %62, %cst_61 {dimension_numbers = #tpu.dot_dimension_numbers<[1], [0], [0], [1], [0, 0, 1, 1], [], []>} : vector<64x8xbf16>, vector<8x256xbf16>, vector<64x256xf32> -> vector<64x256xf32>
    %64 = arith.addf %59, %63 : vector<64x256xf32>
    %c0_62 = arith.constant 0 : index
    %c2_63 = arith.constant 2 : index
    %c8_64 = arith.constant 8 : index
    %c0_65 = arith.constant 0 : index
    %65 = vector.load %arg2[%c0_62, %c2_63, %c8_64, %c0_65] : memref<1x8x64x256xf32, #tpu.memory_space<vmem>>, vector<1x1x8x256xf32>
    %66 = vector.shape_cast %65 : vector<1x1x8x256xf32> to vector<8x256xf32>
    %67 = arith.truncf %66 : vector<8x256xf32> to vector<8x256xbf16>
    %cst_66 = arith.constant dense<0.000000e+00> : vector<64x256xf32>
    %68 = tpu.matmul %1, %67, %cst_66 {dimension_numbers = #tpu.dot_dimension_numbers<[1], [0], [0], [1], [0, 0, 1, 1], [], []>} : vector<64x8xbf16>, vector<8x256xbf16>, vector<64x256xf32> -> vector<64x256xf32>
    %69 = arith.addf %64, %68 : vector<64x256xf32>
    %70 = vector.broadcast %3 : vector<64x1xf32> to vector<64x256xf32>
    %71 = arith.addf %69, %70 : vector<64x256xf32>
    %c0_67 = arith.constant 0 : index
    %c3_68 = arith.constant 3 : index
    %c0_69 = arith.constant 0 : index
    %c0_70 = arith.constant 0 : index
    %72 = vector.load %arg7[%c0_67, %c3_68, %c0_69, %c0_70] : memref<1x8x64x256xf32, #tpu.memory_space<vmem>>, vector<1x1x64x256xf32>
    %73 = vector.shape_cast %72 : vector<1x1x64x256xf32> to vector<64x256xf32>
    %74 = vector.shape_cast %71 : vector<64x256xf32> to vector<1x1x64x256xf32>
    tpu.vector_store %arg7[%c0_67, %c3_68, %c0_69, %c0_70], %74 {strides = array<i32>} : memref<1x8x64x256xf32, #tpu.memory_space<vmem>>, vector<1x1x64x256xf32>,
    %c0_71 = arith.constant 0 : index
    %c4_72 = arith.constant 4 : index
    %c16_73 = arith.constant 16 : index
    %c0_74 = arith.constant 0 : index
    %75 = vector.load %arg2[%c0_71, %c4_72, %c16_73, %c0_74] : memref<1x8x64x256xf32, #tpu.memory_space<vmem>>, vector<1x1x48x256xf32>
    %76 = vector.shape_cast %75 : vector<1x1x48x256xf32> to vector<48x256xf32>
    %77 = arith.truncf %76 : vector<48x256xf32> to vector<48x256xbf16>
    %cst_75 = arith.constant dense<0.000000e+00> : vector<64x256xf32>
    %78 = tpu.matmul %2, %77, %cst_75 {dimension_numbers = #tpu.dot_dimension_numbers<[1], [0], [0], [1], [0, 0, 1, 1], [], []>} : vector<64x48xbf16>, vector<48x256xbf16>, vector<64x256xf32> -> vector<64x256xf32>
    %c0_76 = arith.constant 0 : index
    %c5 = arith.constant 5 : index
    %c0_77 = arith.constant 0 : index
    %c0_78 = arith.constant 0 : index
    %79 = vector.load %arg2[%c0_76, %c5, %c0_77, %c0_78] : memref<1x8x64x256xf32, #tpu.memory_space<vmem>>, vector<1x1x8x256xf32>
    %80 = vector.shape_cast %79 : vector<1x1x8x256xf32> to vector<8x256xf32>
    %81 = arith.truncf %80 : vector<8x256xf32> to vector<8x256xbf16>
    %cst_79 = arith.constant dense<0.000000e+00> : vector<64x256xf32>
    %82 = tpu.matmul %0, %81, %cst_79 {dimension_numbers = #tpu.dot_dimension_numbers<[1], [0], [0], [1], [0, 0, 1, 1], [], []>} : vector<64x8xbf16>, vector<8x256xbf16>, vector<64x256xf32> -> vector<64x256xf32>
    %83 = arith.addf %78, %82 : vector<64x256xf32>
    %c0_80 = arith.constant 0 : index
    %c3_81 = arith.constant 3 : index
    %c8_82 = arith.constant 8 : index
    %c0_83 = arith.constant 0 : index
    %84 = vector.load %arg2[%c0_80, %c3_81, %c8_82, %c0_83] : memref<1x8x64x256xf32, #tpu.memory_space<vmem>>, vector<1x1x8x256xf32>
    %85 = vector.shape_cast %84 : vector<1x1x8x256xf32> to vector<8x256xf32>
    %86 = arith.truncf %85 : vector<8x256xf32> to vector<8x256xbf16>
    %cst_84 = arith.constant dense<0.000000e+00> : vector<64x256xf32>
    %87 = tpu.matmul %1, %86, %cst_84 {dimension_numbers = #tpu.dot_dimension_numbers<[1], [0], [0], [1], [0, 0, 1, 1], [], []>} : vector<64x8xbf16>, vector<8x256xbf16>, vector<64x256xf32> -> vector<64x256xf32>
    %88 = arith.addf %83, %87 : vector<64x256xf32>
    %89 = vector.broadcast %3 : vector<64x1xf32> to vector<64x256xf32>
    %90 = arith.addf %88, %89 : vector<64x256xf32>
    %c0_85 = arith.constant 0 : index
    %c4_86 = arith.constant 4 : index
    %c0_87 = arith.constant 0 : index
    %c0_88 = arith.constant 0 : index
    %91 = vector.load %arg7[%c0_85, %c4_86, %c0_87, %c0_88] : memref<1x8x64x256xf32, #tpu.memory_space<vmem>>, vector<1x1x64x256xf32>
    %92 = vector.shape_cast %91 : vector<1x1x64x256xf32> to vector<64x256xf32>
    %93 = vector.shape_cast %90 : vector<64x256xf32> to vector<1x1x64x256xf32>
    tpu.vector_store %arg7[%c0_85, %c4_86, %c0_87, %c0_88], %93 {strides = array<i32>} : memref<1x8x64x256xf32, #tpu.memory_space<vmem>>, vector<1x1x64x256xf32>,
    %c0_89 = arith.constant 0 : index
    %c5_90 = arith.constant 5 : index
    %c16_91 = arith.constant 16 : index
    %c0_92 = arith.constant 0 : index
    %94 = vector.load %arg2[%c0_89, %c5_90, %c16_91, %c0_92] : memref<1x8x64x256xf32, #tpu.memory_space<vmem>>, vector<1x1x48x256xf32>
    %95 = vector.shape_cast %94 : vector<1x1x48x256xf32> to vector<48x256xf32>
    %96 = arith.truncf %95 : vector<48x256xf32> to vector<48x256xbf16>
    %cst_93 = arith.constant dense<0.000000e+00> : vector<64x256xf32>
    %97 = tpu.matmul %2, %96, %cst_93 {dimension_numbers = #tpu.dot_dimension_numbers<[1], [0], [0], [1], [0, 0, 1, 1], [], []>} : vector<64x48xbf16>, vector<48x256xbf16>, vector<64x256xf32> -> vector<64x256xf32>
    %c0_94 = arith.constant 0 : index
    %c6 = arith.constant 6 : index
    %c0_95 = arith.constant 0 : index
    %c0_96 = arith.constant 0 : index
    %98 = vector.load %arg2[%c0_94, %c6, %c0_95, %c0_96] : memref<1x8x64x256xf32, #tpu.memory_space<vmem>>, vector<1x1x8x256xf32>
    %99 = vector.shape_cast %98 : vector<1x1x8x256xf32> to vector<8x256xf32>
    %100 = arith.truncf %99 : vector<8x256xf32> to vector<8x256xbf16>
    %cst_97 = arith.constant dense<0.000000e+00> : vector<64x256xf32>
    %101 = tpu.matmul %0, %100, %cst_97 {dimension_numbers = #tpu.dot_dimension_numbers<[1], [0], [0], [1], [0, 0, 1, 1], [], []>} : vector<64x8xbf16>, vector<8x256xbf16>, vector<64x256xf32> -> vector<64x256xf32>
    %102 = arith.addf %97, %101 : vector<64x256xf32>
    %c0_98 = arith.constant 0 : index
    %c4_99 = arith.constant 4 : index
    %c8_100 = arith.constant 8 : index
    %c0_101 = arith.constant 0 : index
    %103 = vector.load %arg2[%c0_98, %c4_99, %c8_100, %c0_101] : memref<1x8x64x256xf32, #tpu.memory_space<vmem>>, vector<1x1x8x256xf32>
    %104 = vector.shape_cast %103 : vector<1x1x8x256xf32> to vector<8x256xf32>
    %105 = arith.truncf %104 : vector<8x256xf32> to vector<8x256xbf16>
    %cst_102 = arith.constant dense<0.000000e+00> : vector<64x256xf32>
    %106 = tpu.matmul %1, %105, %cst_102 {dimension_numbers = #tpu.dot_dimension_numbers<[1], [0], [0], [1], [0, 0, 1, 1], [], []>} : vector<64x8xbf16>, vector<8x256xbf16>, vector<64x256xf32> -> vector<64x256xf32>
    %107 = arith.addf %102, %106 : vector<64x256xf32>
    %108 = vector.broadcast %3 : vector<64x1xf32> to vector<64x256xf32>
    %109 = arith.addf %107, %108 : vector<64x256xf32>
    %c0_103 = arith.constant 0 : index
    %c5_104 = arith.constant 5 : index
    %c0_105 = arith.constant 0 : index
    %c0_106 = arith.constant 0 : index
    %110 = vector.load %arg7[%c0_103, %c5_104, %c0_105, %c0_106] : memref<1x8x64x256xf32, #tpu.memory_space<vmem>>, vector<1x1x64x256xf32>
    %111 = vector.shape_cast %110 : vector<1x1x64x256xf32> to vector<64x256xf32>
    %112 = vector.shape_cast %109 : vector<64x256xf32> to vector<1x1x64x256xf32>
    tpu.vector_store %arg7[%c0_103, %c5_104, %c0_105, %c0_106], %112 {strides = array<i32>} : memref<1x8x64x256xf32, #tpu.memory_space<vmem>>, vector<1x1x64x256xf32>,
    %c0_107 = arith.constant 0 : index
    %c6_108 = arith.constant 6 : index
    %c16_109 = arith.constant 16 : index
    %c0_110 = arith.constant 0 : index
    %113 = vector.load %arg2[%c0_107, %c6_108, %c16_109, %c0_110] : memref<1x8x64x256xf32, #tpu.memory_space<vmem>>, vector<1x1x48x256xf32>
    %114 = vector.shape_cast %113 : vector<1x1x48x256xf32> to vector<48x256xf32>
    %115 = arith.truncf %114 : vector<48x256xf32> to vector<48x256xbf16>
    %cst_111 = arith.constant dense<0.000000e+00> : vector<64x256xf32>
    %116 = tpu.matmul %2, %115, %cst_111 {dimension_numbers = #tpu.dot_dimension_numbers<[1], [0], [0], [1], [0, 0, 1, 1], [], []>} : vector<64x48xbf16>, vector<48x256xbf16>, vector<64x256xf32> -> vector<64x256xf32>
    %c0_112 = arith.constant 0 : index
    %c7 = arith.constant 7 : index
    %c0_113 = arith.constant 0 : index
    %c0_114 = arith.constant 0 : index
    %117 = vector.load %arg2[%c0_112, %c7, %c0_113, %c0_114] : memref<1x8x64x256xf32, #tpu.memory_space<vmem>>, vector<1x1x8x256xf32>
    %118 = vector.shape_cast %117 : vector<1x1x8x256xf32> to vector<8x256xf32>
    %119 = arith.truncf %118 : vector<8x256xf32> to vector<8x256xbf16>
    %cst_115 = arith.constant dense<0.000000e+00> : vector<64x256xf32>
    %120 = tpu.matmul %0, %119, %cst_115 {dimension_numbers = #tpu.dot_dimension_numbers<[1], [0], [0], [1], [0, 0, 1, 1], [], []>} : vector<64x8xbf16>, vector<8x256xbf16>, vector<64x256xf32> -> vector<64x256xf32>
    %121 = arith.addf %116, %120 : vector<64x256xf32>
    %c0_116 = arith.constant 0 : index
    %c5_117 = arith.constant 5 : index
    %c8_118 = arith.constant 8 : index
    %c0_119 = arith.constant 0 : index
    %122 = vector.load %arg2[%c0_116, %c5_117, %c8_118, %c0_119] : memref<1x8x64x256xf32, #tpu.memory_space<vmem>>, vector<1x1x8x256xf32>
    %123 = vector.shape_cast %122 : vector<1x1x8x256xf32> to vector<8x256xf32>
    %124 = arith.truncf %123 : vector<8x256xf32> to vector<8x256xbf16>
    %cst_120 = arith.constant dense<0.000000e+00> : vector<64x256xf32>
    %125 = tpu.matmul %1, %124, %cst_120 {dimension_numbers = #tpu.dot_dimension_numbers<[1], [0], [0], [1], [0, 0, 1, 1], [], []>} : vector<64x8xbf16>, vector<8x256xbf16>, vector<64x256xf32> -> vector<64x256xf32>
    %126 = arith.addf %121, %125 : vector<64x256xf32>
    %127 = vector.broadcast %3 : vector<64x1xf32> to vector<64x256xf32>
    %128 = arith.addf %126, %127 : vector<64x256xf32>
    %c0_121 = arith.constant 0 : index
    %c6_122 = arith.constant 6 : index
    %c0_123 = arith.constant 0 : index
    %c0_124 = arith.constant 0 : index
    %129 = vector.load %arg7[%c0_121, %c6_122, %c0_123, %c0_124] : memref<1x8x64x256xf32, #tpu.memory_space<vmem>>, vector<1x1x64x256xf32>
    %130 = vector.shape_cast %129 : vector<1x1x64x256xf32> to vector<64x256xf32>
    %131 = vector.shape_cast %128 : vector<64x256xf32> to vector<1x1x64x256xf32>
    tpu.vector_store %arg7[%c0_121, %c6_122, %c0_123, %c0_124], %131 {strides = array<i32>} : memref<1x8x64x256xf32, #tpu.memory_space<vmem>>, vector<1x1x64x256xf32>,
    %c0_125 = arith.constant 0 : index
    %c7_126 = arith.constant 7 : index
    %c16_127 = arith.constant 16 : index
    %c0_128 = arith.constant 0 : index
    %132 = vector.load %arg2[%c0_125, %c7_126, %c16_127, %c0_128] : memref<1x8x64x256xf32, #tpu.memory_space<vmem>>, vector<1x1x48x256xf32>
    %133 = vector.shape_cast %132 : vector<1x1x48x256xf32> to vector<48x256xf32>
    %134 = arith.truncf %133 : vector<48x256xf32> to vector<48x256xbf16>
    %cst_129 = arith.constant dense<0.000000e+00> : vector<64x256xf32>
    %135 = tpu.matmul %2, %134, %cst_129 {dimension_numbers = #tpu.dot_dimension_numbers<[1], [0], [0], [1], [0, 0, 1, 1], [], []>} : vector<64x48xbf16>, vector<48x256xbf16>, vector<64x256xf32> -> vector<64x256xf32>
    %c0_130 = arith.constant 0 : index
    %c6_131 = arith.constant 6 : index
    %c8_132 = arith.constant 8 : index
    %c0_133 = arith.constant 0 : index
    %136 = vector.load %arg2[%c0_130, %c6_131, %c8_132, %c0_133] : memref<1x8x64x256xf32, #tpu.memory_space<vmem>>, vector<1x1x8x256xf32>
    %137 = vector.shape_cast %136 : vector<1x1x8x256xf32> to vector<8x256xf32>
    %138 = arith.truncf %137 : vector<8x256xf32> to vector<8x256xbf16>
    %cst_134 = arith.constant dense<0.000000e+00> : vector<64x256xf32>
    %139 = tpu.matmul %1, %138, %cst_134 {dimension_numbers = #tpu.dot_dimension_numbers<[1], [0], [0], [1], [0, 0, 1, 1], [], []>} : vector<64x8xbf16>, vector<8x256xbf16>, vector<64x256xf32> -> vector<64x256xf32>
    %140 = arith.addf %135, %139 : vector<64x256xf32>
    %141 = vector.broadcast %3 : vector<64x1xf32> to vector<64x256xf32>
    %142 = arith.addf %140, %141 : vector<64x256xf32>
    %c0_135 = arith.constant 0 : index
    %c7_136 = arith.constant 7 : index
    %c0_137 = arith.constant 0 : index
    %c0_138 = arith.constant 0 : index
    %143 = vector.load %arg7[%c0_135, %c7_136, %c0_137, %c0_138] : memref<1x8x64x256xf32, #tpu.memory_space<vmem>>, vector<1x1x64x256xf32>
    %144 = vector.shape_cast %143 : vector<1x1x64x256xf32> to vector<64x256xf32>
    %145 = vector.shape_cast %142 : vector<64x256xf32> to vector<1x1x64x256xf32>
    tpu.vector_store %arg7[%c0_135, %c7_136, %c0_137, %c0_138], %145 {strides = array<i32>} : memref<1x8x64x256xf32, #tpu.memory_space<vmem>>, vector<1x1x64x256xf32>,
    return
  }
  func.func @transform_0(%arg0: i32, %arg1: i32) -> (i32, i32, i32, i32) {
    %c0_i32 = arith.constant 0 : i32
    %c0_i32_0 = arith.constant 0 : i32
    %c0_i32_1 = arith.constant 0 : i32
    return %arg0, %c0_i32, %c0_i32_0, %arg1 : i32, i32, i32, i32
  }
  func.func @transform_1(%arg0: i32, %arg1: i32) -> (i32, i32) {
    %c0_i32 = arith.constant 0 : i32
    %c0_i32_0 = arith.constant 0 : i32
    %c0_i32_1 = arith.constant 0 : i32
    return %c0_i32, %c0_i32_0 : i32, i32
  }
  func.func @transform_2(%arg0: i32, %arg1: i32) -> (i32, i32) {
    %c0_i32 = arith.constant 0 : i32
    %c0_i32_0 = arith.constant 0 : i32
    %c0_i32_1 = arith.constant 0 : i32
    return %c0_i32, %c0_i32_0 : i32, i32
  }
  func.func @transform_3(%arg0: i32, %arg1: i32) -> (i32, i32) {
    %c0_i32 = arith.constant 0 : i32
    %c0_i32_0 = arith.constant 0 : i32
    %c0_i32_1 = arith.constant 0 : i32
    return %c0_i32, %c0_i32_0 : i32, i32
  }
  func.func @transform_4(%arg0: i32, %arg1: i32) -> (i32, i32) {
    %c0_i32 = arith.constant 0 : i32
    %c0_i32_0 = arith.constant 0 : i32
    %c0_i32_1 = arith.constant 0 : i32
    return %c0_i32, %c0_i32_0 : i32, i32
  }
  func.func @transform_5(%arg0: i32, %arg1: i32) -> (i32, i32, i32, i32) {
    %c0_i32 = arith.constant 0 : i32
    %c0_i32_0 = arith.constant 0 : i32
    %c0_i32_1 = arith.constant 0 : i32
    return %arg0, %c0_i32, %c0_i32_0, %arg1 : i32, i32, i32, i32
  }
}

</mosaic_0001>

<bundles_post_ra>
// kernel: tpu_custom_call.1
= control target key start
LH: loop header
LB: loop body
LE: loop exit
PB: predicated region body
PF: predicated region fallthrough
CT: control target
= control target key end

     0   :  { %10 = vsyncpa [#allocation3], 0  ;;  %s4561_s0 = inlined_call_operand.hbm [shape: f32[2,8,64,256], index: 0, kind: input, shape index: {}]   ;;  %s4562_s1 = inlined_call_operand.vmem [shape: bf16[64,8], index: 1, kind: input, shape index: {}]   ;;  %s4563_s2 = inlined_call_operand.vmem [shape: bf16[64,8], index: 2, kind: input, shape index: {}]   ;;  %s4564_s3 = inlined_call_operand.vmem [shape: bf16[64,48], index: 3, kind: input, shape index: {}]   ;;  %s4565_s4 = inlined_call_operand.vmem [shape: f32[64,1], index: 4, kind: input, shape index: {}]   ;;  %s4566_s5 = inlined_call_operand.hbm [shape: f32[2,8,64,256], index: 5, kind: output, shape index: {}]  }
   0x1   :  { %12 = vsyncpa [#allocation3 + $0x1], 0 }
   0x2   :  { %13 = vsyncpa [#allocation4], 0 }
   0x3   :  { %15 = vsyncpa [#allocation4 + $0x1], 0  ;;  %s3603_s18 = smov 0   ;;  %s3605_s19 = smov 0  }
   0x4   :  { %s3607_s20 = smov 0   ;;  %s3609_s21 = smov 0  }
   0x5   :  { %s3611_s22 = smov 0   ;;  %s3613_s23 = smov 0  }
   0x6 LB: > { %s2794_s24 = sadd.s32 4294967295, %s3564_s23   ;;  %s2795_s25 = sadd.s32 4294967294, %s3564_s23   ;;  %s3564_s23 = sphi %s3613_s23, %s21_s23   ;;  %s3560_s22 = sphi %s3611_s22, %s4581_s22   ;;  %s3556_s21 = sphi %s3609_s21, %s4580_s21   ;;  %s3552_s20 = sphi %s3607_s20, %s4579_s20   ;;  %s3548_s19 = sphi %s3605_s19, %s4578_s19   ;;  %s3544_s18 = sphi %s3603_s18, %s4577_s18  }
   0x7   : > { %s33_s26 = sadd.s32 1, %s3560_s22  ;;  %s42_s27 = sadd.s32 1, %s3552_s20 }
   0x8   : > { %p35_p0 = scmp.ge.s32.totalorder %s33_s26, 2  ;;  %p49_p1 = scmp.ne.s32.totalorder %s3552_s20, %s3548_s19 }
   0x9   : > { %p50_p2 = scmp.eq.s32.totalorder %s3564_s23, 0  ;;  %p55_p3 = scmp.ne.s32.totalorder %s3548_s19, %s3544_s18 }
   0xa   : > { %s4583_s26 = smov (%p35_p0, %s33_s26), 0  ;;  %p56_p5 = scmp.eq.s32.totalorder %s2794_s24, 0 }
   0xb   : > { %p3644_p4 = por %p50_p2, %p49_p1  ;;  %s37_s29 = ssub.s32 %s3560_s22, %s4583_s26 }
   0xc   : > { %p165_p6 = scmp.eq.s32.totalorder %s2794_s24, 1  ;;  %p40_p7 = scmp.eq.s32.totalorder %s37_s29, 0 }
   0xd   : > { %p3650_p8 = por %p56_p5, %p55_p3  ;;  %p171_p10 = scmp.eq.s32.totalorder %s2795_s25, 1 }
   0xe   : > { %p3654_p9 = por %p165_p6, %p49_p1  ;;  %p3383_p13 = scmp.lt.s32.totalorder %s3564_s23, 2 }
   0xf   : > { %s3659_s7 = scalar_select %p40_p7, %s3552_s20, %s42_s27  }
  0x10   : > { %s4570_s6 = scalar_select %p3654_p9, 1, 0 }
  0x11   : > { %p3661_p11 = por %p171_p10, %p55_p3  ;;  %s203_s9 = sand.u32 1, %s3552_s20  }
  0x12   : > { %s2798_s10 = sshll.u32 %s203_s9, 10  ;;  %s3145_s11 = sshll.u32 %s3560_s22, 14 }
  0x13   : > { %s4571_s8 = scalar_select %p3661_p11, 1, 0 }
  0x14   : > { %s3672_s14 = scalar_lea.hbm %s4561_s0, %s3145_s11  ;;  %s207_s15 = scalar_lea.vmem [#allocation2], %s2798_s10 }
  0x15   : > { %s216_s16 = sshll.u32 %s207_s15, 4  ;;  %p3678_p0 = pnand %p3383_p13, %p3644_p4  ;;  %s3674_s16 = int_to_ptr.vmem [resolvable:$true] %s216_s16 }
  0x16   : > { %s3683_s24 = scalar_lea.sflag [#allocation3], %s203_s9  ;;  %s3452_s25 = scalar_lea.hbm %s3672_s14, 16384 }
  0x17   : > { %p3453_p2 = scmp.ne.s32.totalorder %s3672_s14, %s3452_s25  ;;  %p3454_p3 = pneg %p3678_p0 }
  0x18   : > { %s3457_s28 = scalar_lea.hbm %s4561_s0, 32768  ;;  %p3458_p4 = scmp.lt.u32.totalorder %s3672_s14, %s4561_s0 }
  0x19   : > { %p3455_p5 = pnand %p3454_p3, %p3453_p2  ;;  %p3459_p7 = scmp.lt.u32.totalorder %s3457_s28, %s3452_s25 }
  0x1a   : > { %p3461_p13 = scmp.lt.u32.totalorder %s3452_s25, %s3672_s14 }
  0x1b   : > { %p3456_p6 = pneg %p3455_p5  ;;  %p3460_p10 = por %p3459_p7, %p3458_p4 }
  0x1d   : > { %p3462_p12 = por %p3461_p13, %p3460_p10 }
  0x1f   : > { %p3463_p1 = pnand %p3462_p12, %p3456_p6 }
  0x21   : > { %3466 = shalt.err (!%p3463_p1)
}
  0x22   : > { %s3467_s9 = scalar_lea.vmem %s3674_s16, 16384  ;;  %s3566_s12 = smov [#allocation2]  }
  0x23   : > { %p3468_p2 = scmp.ne.s32.totalorder %s3674_s16, %s3467_s9  ;;  %s3472_s13 = sshll.u32 %s3566_s12, 4  ;;  %s3473_s13 = int_to_ptr.vmem [resolvable:$false] %s3472_s13 }
  0x24   : > { %s3474_s15 = scalar_lea.vmem %s3473_s13, 32768  ;;  %p3475_p9 = scmp.lt.s32.totalorder %s3674_s16, %s3473_s13 }
  0x25   : > { %p3470_p5 = pnand %p3468_p2, %p3454_p3  ;;  %p3476_p4 = scmp.lt.s32.totalorder %s3474_s15, %s3467_s9 }
  0x27   : > { %p3471_p11 = pneg %p3470_p5  ;;  %p3477_p7 = por %p3476_p4, %p3475_p9 }
  0x29   : > { %p3478_p10 = pnand %p3477_p7, %p3471_p11 }
  0x2b   : > { %3481 = shalt.err (!%p3478_p10)
}
  0x2c   : > { %s3567_s25 = smov 256   ;;  %s3568_s27 = smov 16  }
  0x2d   : > { %3378 = dma.hbm_to_vmem [thread:$0]  (!%p3678_p0), %s3672_s14, 16384, %s3674_s16, %s3683_s24, %s3567_s25, %s3567_s25, %s3568_s27  }
  0x2e   : > { %p224_p12 = scmp.lt.s32.totalorder %s3564_s23, 3  ;;  %p4573_p1 = scmp.ge.s32.totalorder %s3564_s23, 1 }
  0x30   : > { %p225_p3 = pnand %p4573_p1, %p224_p12 }
  0x31   : > { %s3715_s29 = sand.u32 (!%p225_p3), 1, %s3548_s19  }
  0x32   : > { %228 = sbr.rel (%p225_p3) target bundleno = 642 (0x282), region = 40  ;;  %s2802_s28 = sshll.u32 (!%p225_p3), %s3715_s29, 10 }
  0x33   : > { %s231_s10 = scalar_lea.sflag (!%p225_p3), [#allocation3], %s3715_s29  ;;  %s3721_s11 = scalar_lea.vmem (!%p225_p3), [#allocation2], %s2802_s28 }
  0x39   : > { %3535 = dma.done.wait (%p3650_p8), %s231_s10, 16384  }
  0x3a   : > { %3537 = vsyncadd (%p3650_p8), %s231_s10, 4294950912  ;;  %v3569_v0 = vmov 0   ;;  %v2805_v1 = vld [vmem:[%s3721_s11 + $0x88] sm:$0xff]  ;;  %vm352_vm0 = vcmask 1043456   ;;  %v2804_v3 = vld [vmem:[%s3721_s11 + $0x80] sm:$0xff]  ;;  %vm339_vm1 = vcmask 64512  }
  0x3b   : > { %391 = vmatprep.mubr.bf16.mxu0 %v3569_v0  ;;  %671 = vmatprep.mubr.bf16.mxu1 %v3569_v0  ;;  %v2836_v2 = vld [vmem:[%s3721_s11 + $0x108] sm:$0xff]  ;;  %v318_v4 = vpack.c.bf16 %v2805_v1, %v2805_v1  ;;  %v317_v6 = vpack.c.bf16 %v2804_v3, %v2804_v3  ;;  %v2835_v7 = vld [vmem:[%s3721_s11 + $0x100] sm:$0xff]  ;;  %v299_v11 = vld [vmem:[%s3721_s11 + $0x38] sm:$0xff]  ;;  %vm452_vm2 = vcmask 392192   ;;  %s4135_s24 = scalar_lea.vmem [#allocation5], %s2802_s28  ;;  %s3146_s28 = sshll.u32 %s3556_s21, 14 }
  0x3c   : > { %3438 = vset.pattern.permute.xlu0 %v3569_v0  ;;  %3439 = vset.pattern.permute.xlu1 %v3569_v0  ;;  %v632_v5 = vpack.c.bf16 %v2836_v2, %v2836_v2  ;;  %v631_v8 = vpack.c.bf16 %v2835_v7, %v2835_v7  ;;  %v3738_v9 = vld [vmem:[%s4562_s1] sm:$0xff]   ;;  %v297_v10 = vld [vmem:[%s3721_s11 + $0x28] sm:$0xff]  ;;  %v2826_v15 = vld [vmem:[%s3721_s11 + $0xb8] sm:$0xff]  ;;  %s4504_s12 = scalar_lea.hbm %s4566_s5, %s3146_s28  ;;  %s2692_s13 = scalar_lea.sflag [#allocation4], %s3715_s29 }
  0x3d   : > { %2810 = vmatprep.subr.msk.bf16.mxu0 %vm352_vm0, %v318_v4  ;;  %v354_v12 = vsel %vm352_vm0, %v317_v6, 0  ;;  %v309_v13 = vpack.c.bf16 %v299_v11, %v297_v10  ;;  %v2824_v14 = vld [vmem:[%s3721_s11 + $0xa8] sm:$0xff]  ;;  %v296_v16 = vld [vmem:[%s3721_s11 + $0x20] sm:$0xff]  ;;  %v298_v19 = vld [vmem:[%s3721_s11 + $0x30] sm:$0xff]  ;;  %p4574_p9 = scmp.ne.s32.totalorder %s4570_s6, 0  ;;  %s3570_s25 = smov [#allocation5]  }
  0x3e   : > { %2837 = vmatprep.subr.msk.bf16.mxu1 %vm352_vm0, %v632_v5  ;;  %360 = vmatpush1.bf16.msra.mxu0 %v354_v12  ;;  %v634_v17 = vsel %vm352_vm0, %v631_v8, 0  ;;  %v623_v18 = vpack.c.bf16 %v2826_v15, %v2824_v14  ;;  %v2823_v20 = vld [vmem:[%s3721_s11 + $0xa0] sm:$0xff]  ;;  %v2825_v21 = vld [vmem:[%s3721_s11 + $0xb0] sm:$0xff]  ;;  %v308_v22 = vpack.c.bf16 %v298_v19, %v296_v16  ;;  %v301_v24 = vld [vmem:[%s3721_s11 + $0x48] sm:$0xff]  ;;  %s3486_s27 = sshll.u32 %s3570_s25, 4  ;;  %s3487_s27 = int_to_ptr.vmem [resolvable:$false] %s3486_s27 }
  0x3f   : > { %640 = vmatpush1.bf16.msra.mxu1 %v634_v17  ;;  %465 = vmatprep.subr.bf16.mxu0 %v309_v13  ;;  %v622_v23 = vpack.c.bf16 %v2825_v21, %v2823_v20  ;;  %v303_v25 = vld [vmem:[%s3721_s11 + $0x58] sm:$0xff]  ;;  %v2828_v26 = vld [vmem:[%s3721_s11 + $0xc8] sm:$0xff]  ;;  %v300_v29 = vld [vmem:[%s3721_s11 + $0x40] sm:$0xff]  ;;  %s3488_s10 = scalar_lea.vmem %s3487_s27, 32768 }
  0x40   : > { %712 = vmatprep.subr.bf16.mxu1 %v623_v18  ;;  %v311_v27 = vpack.c.bf16 %v303_v25, %v301_v24  ;;  %v2830_v28 = vld [vmem:[%s3721_s11 + $0xd8] sm:$0xff]  ;;  %v302_v30 = vld [vmem:[%s3721_s11 + $0x50] sm:$0xff]  ;;  %v2827_v33 = vld [vmem:[%s3721_s11 + $0xc0] sm:$0xff] }
  0x41   : > { %2811 = vmatmul.mubr.msk.bf16.vlgmr.msra.gmra.mrb[0].mxu0 %vm339_vm1, %v3738_v9  ;;  %v625_v31 = vpack.c.bf16 %v2830_v28, %v2828_v26  ;;  %v310_v32 = vpack.c.bf16 %v302_v30, %v300_v29  ;;  %v2829_v34 = vld [vmem:[%s3721_s11 + $0xd0] sm:$0xff]  ;;  %v3768_v35 = vld [vmem:[%s4562_s1 + $0x8] sm:$0xff]   ;;  %v307_v38 = vld [vmem:[%s3721_s11 + $0x78] sm:$0xff] }
  0x42   : > { %2838 = vmatmul.mubr.msk.bf16.vlgmr.msra.gmra.mrb[0].mxu1 %vm339_vm1, %v3738_v9  ;;  %466 = vmatpush1.bf16.msra.mxu0 %v308_v22  ;;  %v624_v36 = vpack.c.bf16 %v2829_v34, %v2827_v33  ;;  %v305_v37 = vld [vmem:[%s3721_s11 + $0x68] sm:$0xff]  ;;  %v2834_v40 = vld [vmem:[%s3721_s11 + $0xf8] sm:$0xff]  ;;  %v304_v43 = vld [vmem:[%s3721_s11 + $0x60] sm:$0xff] }
  0x43   : > { %713 = vmatpush1.bf16.msra.mxu1 %v622_v23  ;;  %401 = vmatprep.mubr.bf16.mxu0 %v3569_v0  ;;  %v2832_v39 = vld [vmem:[%s3721_s11 + $0xe8] sm:$0xff]  ;;  %v313_v41 = vpack.c.bf16 %v307_v38, %v305_v37  ;;  %v306_v44 = vld [vmem:[%s3721_s11 + $0x70] sm:$0xff]  ;;  %v2831_v45 = vld [vmem:[%s3721_s11 + $0xe0] sm:$0xff] }
  0x44   : > { %681 = vmatprep.mubr.bf16.mxu1 %v3569_v0  ;;  %467 = vmatprep.subr.bf16.mxu0 %v311_v27  ;;  %v627_v42 = vpack.c.bf16 %v2834_v40, %v2832_v39  ;;  %v2833_v46 = vld [vmem:[%s3721_s11 + $0xf0] sm:$0xff]  ;;  %v312_v47 = vpack.c.bf16 %v306_v44, %v304_v43  ;;  %v786_v49 = vld [vmem:[%s3721_s11 + $0x18] sm:$0xff]  ;;  %v2884_v50 = vld [vmem:[%s3721_s11 + $0x188] sm:$0xff] }
  0x45   : > { %714 = vmatprep.subr.bf16.mxu1 %v625_v31  ;;  %v626_v48 = vpack.c.bf16 %v2833_v46, %v2831_v45  ;;  %v788_v51 = vpack.c.bf16 %v786_v49, %v786_v49  ;;  %v971_v52 = vpack.c.bf16 %v2884_v50, %v2884_v50  ;;  %v3791_v53 = vld [vmem:[%s4562_s1 + $0x10] sm:$0xff]   ;;  %v3803_v54 = vld [vmem:[%s4562_s1 + $0x18] sm:$0xff]   ;;  %v2883_v55 = vld [vmem:[%s3721_s11 + $0x180] sm:$0xff] }
  0x46   : > { %468 = vmatpush1.bf16.msra.mxu0 %v310_v32  ;;  %v288_v56 = vld [vmem:[%s4565_s4] sm:$0xff]  ;;  %v785_v57 = vld [vmem:[%s3721_s11 + $0x10] sm:$0xff]  ;;  %v289_v58 = vld [vmem:[%s4565_s4 + $0x8] sm:$0xff]  ;;  %v970_v60 = vpack.c.bf16 %v2883_v55, %v2883_v55 }
  0x47   : > { %715 = vmatpush1.bf16.msra.mxu1 %v624_v36  ;;  %469 = vmatprep.subr.bf16.mxu0 %v313_v41  ;;  %v290_v59 = vld [vmem:[%s4565_s4 + $0x10] sm:$0xff]  ;;  %v787_v61 = vpack.c.bf16 %v785_v57, %v785_v57  ;;  %v291_v62 = vld [vmem:[%s4565_s4 + $0x18] sm:$0xff]  ;;  %v3828_v63 = vld [vmem:[%s4564_s3] sm:$0xff]  }
  0x48   : > { %716 = vmatprep.subr.bf16.mxu1 %v627_v42  ;;  %540 = vperm.xlu0 %3438, %v288_v56   ;;  %v2872_v1 = vld [vmem:[%s3721_s11 + $0x128] sm:$0xff]  ;;  %v2874_v2 = vld [vmem:[%s3721_s11 + $0x138] sm:$0xff]  ;;  %v292_v4 = vld [vmem:[%s4565_s4 + $0x20] sm:$0xff]  ;;  %v973_v5 = vsel %vm352_vm0, %v970_v60, 0 }
  0x49   : > { %2812 = vmatmul.mubr.msk.bf16.gmra.mrb[4].mxu0 %vm339_vm1, %v3768_v35  ;;  %550 = vperm.xlu1 %3439, %v290_v59   ;;  %v2930_v3 = vld [vmem:[%s3721_s11 + $0x208] sm:$0xff]  ;;  %v822_v6 = vsel %vm352_vm0, %v787_v61, 0  ;;  %v962_v7 = vpack.c.bf16 %v2874_v2, %v2872_v1  ;;  %v294_v11 = vld [vmem:[%s4565_s4 + $0x30] sm:$0xff]  ;;  %v295_v13 = vld [vmem:[%s4565_s4 + $0x38] sm:$0xff] }
  0x4a   : > { %2839 = vmatmul.mubr.msk.bf16.gmra.mrb[4].mxu1 %vm339_vm1, %v3768_v35  ;;  %411 = vmatprep.mubr.bf16.mxu0 %v3569_v0  ;;  %v1278_v8 = vpack.c.bf16 %v2930_v3, %v2930_v3  ;;  %v293_v10 = vld [vmem:[%s4565_s4 + $0x28] sm:$0xff]  ;;  %v3868_v14 = vld [vmem:[%s4564_s3 + $0x10] sm:$0xff]   ;;  %v3879_v15 = vld [vmem:[%s4564_s3 + $0x18] sm:$0xff]  }
  0x4b   : > { %691 = vmatprep.mubr.bf16.mxu1 %v3569_v0  ;;  %470 = vmatpush1.bf16.msra.mxu0 %v312_v47  ;;  %v3853_v12 = vld [vmem:[%s4564_s3 + $0x8] sm:$0xff]   ;;  %v2929_v16 = vld [vmem:[%s3721_s11 + $0x200] sm:$0xff]  ;;  %v2873_v18 = vld [vmem:[%s3721_s11 + $0x130] sm:$0xff] }
  0x4c   : > { %717 = vmatpush1.bf16.msra.mxu1 %v626_v48  ;;  %2885 = vmatprep.subr.msk.bf16.mxu0 %vm352_vm0, %v971_v52  ;;  %v2871_v17 = vld [vmem:[%s3721_s11 + $0x120] sm:$0xff]  ;;  %v1277_v19 = vpack.c.bf16 %v2929_v16, %v2929_v16  ;;  %v2876_v20 = vld [vmem:[%s3721_s11 + $0x148] sm:$0xff]  ;;  %v2878_v21 = vld [vmem:[%s3721_s11 + $0x158] sm:$0xff] }
  0x4d   : > { %2850 = vmatprep.subr.msk.bf16.mxu1 %vm352_vm0, %v788_v51  ;;  %545 = vperm.xlu0 %3438, %v289_v58   ;;  %v3895_v22 = vld [vmem:[%s4563_s2] sm:$0xff]   ;;  %v961_v23 = vpack.c.bf16 %v2873_v18, %v2871_v17  ;;  %v2918_v24 = vld [vmem:[%s3721_s11 + $0x1a8] sm:$0xff]  ;;  %v2920_v25 = vld [vmem:[%s3721_s11 + $0x1b8] sm:$0xff]  ;;  %v964_v29 = vpack.c.bf16 %v2878_v21, %v2876_v20 }
  0x4e   : > { %555 = vperm.xlu1 %3439, %v291_v62   ;;  %v2875_v26 = vld [vmem:[%s3721_s11 + $0x140] sm:$0xff]  ;;  %v2877_v27 = vld [vmem:[%s3721_s11 + $0x150] sm:$0xff]  ;;  %v1280_v28 = vsel %vm352_vm0, %v1277_v19, 0  ;;  %v2880_v30 = vld [vmem:[%s3721_s11 + $0x168] sm:$0xff]  ;;  %v1269_v32 = vpack.c.bf16 %v2920_v25, %v2918_v24 }
  0x4f   : > { %v2882_v31 = vld [vmem:[%s3721_s11 + $0x178] sm:$0xff]  ;;  %v963_v33 = vpack.c.bf16 %v2877_v27, %v2875_v26  ;;  %v2879_v36 = vld [vmem:[%s3721_s11 + $0x160] sm:$0xff]  ;;  %v2881_v37 = vld [vmem:[%s3721_s11 + $0x170] sm:$0xff] }
  0x50   : > { %v966_v34 = vpack.c.bf16 %v2882_v31, %v2880_v30  ;;  %v2895_v38 = vld [vmem:[%s3721_s11 + $0x98] sm:$0xff]  ;;  %v3916_v39 = vld [vmem:[%s4563_s2 + $0x8] sm:$0xff]   ;;  %v965_v40 = vpack.c.bf16 %v2881_v37, %v2879_v36  ;;  %v3928_v42 = vld [vmem:[%s4563_s2 + $0x10] sm:$0xff]  }
  0x51   : > { %2813 = vmatmul.mubr.msk.bf16.gmra.mrb[8].mxu0 %vm339_vm1, %v3791_v53  ;;  %560 = vperm.xlu0 %3438, %v292_v4   ;;  %v1127_v41 = vpack.c.bf16 %v2895_v38, %v2895_v38  ;;  %v3939_v43 = vld [vmem:[%s4563_s2 + $0x18] sm:$0xff]   ;;  %v2894_v44 = vld [vmem:[%s3721_s11 + $0x90] sm:$0xff]  ;;  %v2917_v46 = vld [vmem:[%s3721_s11 + $0x1a0] sm:$0xff] }
  0x52   : > { %2840 = vmatmul.mubr.msk.bf16.gmra.mrb[8].mxu1 %vm339_vm1, %v3791_v53  ;;  %421 = vmatprep.mubr.bf16.mxu0 %v3569_v0  ;;  %v1126_v45 = vpack.c.bf16 %v2894_v44, %v2894_v44  ;;  %v2919_v47 = vld [vmem:[%s3721_s11 + $0x1b0] sm:$0xff]  ;;  %v2922_v48 = vld [vmem:[%s3721_s11 + $0x1c8] sm:$0xff]  ;;  %v2924_v49 = vld [vmem:[%s3721_s11 + $0x1d8] sm:$0xff] }
  0x53   : > { %701 = vmatprep.mubr.bf16.mxu1 %v3569_v0  ;;  %565 = vperm.xlu1 %3439, %v293_v10   ;;  %v2976_v50 = vld [vmem:[%s3721_s11 + $0x288] sm:$0xff]  ;;  %v1268_v52 = vpack.c.bf16 %v2919_v47, %v2917_v46  ;;  %v1271_v55 = vpack.c.bf16 %v2924_v49, %v2922_v48  ;;  %v2921_v56 = vld [vmem:[%s3721_s11 + $0x1c0] sm:$0xff]  ;;  %v2923_v57 = vld [vmem:[%s3721_s11 + $0x1d0] sm:$0xff] }
  0x54   : > { %v1129_v51 = vsel %vm352_vm0, %v1126_v45, 0  ;;  %v2926_v58 = vld [vmem:[%s3721_s11 + $0x1e8] sm:$0xff]  ;;  %v2928_v59 = vld [vmem:[%s3721_s11 + $0x1f8] sm:$0xff]  ;;  %v1585_v60 = vpack.c.bf16 %v2976_v50, %v2976_v50  ;;  %v1270_v61 = vpack.c.bf16 %v2923_v57, %v2921_v56  ;;  %v2925_v1 = vld [vmem:[%s3721_s11 + $0x1e0] sm:$0xff] }
  0x55   : > { %570 = vperm.xlu0 %3438, %v294_v11   ;;  %v1273_v62 = vpack.c.bf16 %v2928_v59, %v2926_v58  ;;  %v2927_v2 = vld [vmem:[%s3721_s11 + $0x1f0] sm:$0xff]  ;;  %v2941_v3 = vld [vmem:[%s3721_s11 + $0x118] sm:$0xff]  ;;  %v2964_v11 = vld [vmem:[%s3721_s11 + $0x228] sm:$0xff] }
  0x56   : > { %v1272_v4 = vpack.c.bf16 %v2927_v2, %v2925_v1  ;;  %v3022_v16 = vld [vmem:[%s3721_s11 + $0x308] sm:$0xff]  ;;  %v3021_v21 = vld [vmem:[%s3721_s11 + $0x300] sm:$0xff]  ;;  %v2965_v24 = vld [vmem:[%s3721_s11 + $0x230] sm:$0xff] }
  0x57   : > { %575 = vperm.xlu1 %3439, %v295_v13   ;;  %v2966_v13 = vld [vmem:[%s3721_s11 + $0x238] sm:$0xff]  ;;  %v1892_v20 = vpack.c.bf16 %v3022_v16, %v3022_v16  ;;  %v1891_v25 = vpack.c.bf16 %v3021_v21, %v3021_v21  ;;  %v2968_v26 = vld [vmem:[%s3721_s11 + $0x248] sm:$0xff]  ;;  %v2967_v31 = vld [vmem:[%s3721_s11 + $0x240] sm:$0xff] }
  0x58   : > { %v1576_v19 = vpack.c.bf16 %v2966_v13, %v2964_v11  ;;  %v2970_v27 = vld [vmem:[%s3721_s11 + $0x258] sm:$0xff]  ;;  %v2972_v36 = vld [vmem:[%s3721_s11 + $0x268] sm:$0xff]  ;;  %v2971_v44 = vld [vmem:[%s3721_s11 + $0x260] sm:$0xff] }
  0x59   : > { %2814 = vmatmul.mubr.msk.bf16.gmra.mrb[12].mxu0 %vm339_vm1, %v3803_v54  ;;  %v3012_v30 = vld [vmem:[%s3721_s11 + $0x2b8] sm:$0xff]  ;;  %v2973_v45 = vld [vmem:[%s3721_s11 + $0x270] sm:$0xff]  ;;  %v3068_v57 = vld [vmem:[%s3721_s11 + $0x388] sm:$0xff] }
  0x5a   : > { %2841 = vmatmul.mubr.msk.bf16.gmra.mrb[12].mxu1 %vm339_vm1, %v3803_v54  ;;  %497 = vmatprep.mubr.bf16.mxu0 %v3569_v0  ;;  %v2974_v37 = vld [vmem:[%s3721_s11 + $0x278] sm:$0xff]  ;;  %v1579_v47 = vpack.c.bf16 %v2973_v45, %v2971_v44  ;;  %v2986_v49 = vld [vmem:[%s3721_s11 + $0x190] sm:$0xff]  ;;  %v3018_v1 = vld [vmem:[%s3721_s11 + $0x2e8] sm:$0xff] }
  0x5b   : > { %744 = vmatprep.mubr.bf16.mxu1 %v3569_v0  ;;  %v2987_v46 = vld [vmem:[%s3721_s11 + $0x198] sm:$0xff]  ;;  %v1740_v50 = vpack.c.bf16 %v2986_v49, %v2986_v49  ;;  %v3067_v13 = vld [vmem:[%s3721_s11 + $0x380] sm:$0xff]  ;;  %v3032_v16 = vld [vmem:[%s3721_s11 + $0x210] sm:$0xff] }
  0x5c   : > { %v1741_v48 = vpack.c.bf16 %v2987_v46, %v2987_v46  ;;  %v3016_v56 = vld [vmem:[%s3721_s11 + $0x2d8] sm:$0xff]  ;;  %v3057_v44 = vld [vmem:[%s3721_s11 + $0x330] sm:$0xff] }
  0x5d   : > { %v1743_v58 = vsel %vm352_vm0, %v1740_v50, 0  ;;  %v3020_v2 = vld [vmem:[%s3721_s11 + $0x2f8] sm:$0xff]  ;;  %v3060_v50 = vld [vmem:[%s3721_s11 + $0x348] sm:$0xff] }
  0x5e   : > { %v3114_v21 = vld [vmem:[%s3721_s11 + $0x318] sm:$0xff] }
  0x61   : > { %2819 = vmatmul.mubr.msk.bf16.vlgmr.msra.gmra.mrb[0].mxu0 %vm452_vm2, %v3828_v63 }
  0x62   : > { %2842 = vmatmul.mubr.msk.bf16.vlgmr.msra.gmra.mrb[0].mxu1 %vm452_vm2, %v3828_v63  ;;  %979 = vmatpush1.bf16.msra.mxu0 %v973_v5  ;;  %v1434_v5 = vpack.c.bf16 %v2941_v3, %v2941_v3  ;;  %v2199_v3 = vpack.c.bf16 %v3068_v57, %v3068_v57  ;;  %v3102_v57 = vld [vmem:[%s3721_s11 + $0x3a8] sm:$0xff] }
  0x63   : > { %828 = vmatpush1.bf16.msra.mxu1 %v822_v6  ;;  %507 = vmatprep.mubr.bf16.mxu0 %v3569_v0  ;;  %v2975_v6 = vld [vmem:[%s3721_s11 + $0x280] sm:$0xff] }
  0x64   : > { %754 = vmatprep.mubr.bf16.mxu1 %v3569_v0  ;;  %1051 = vmatprep.subr.bf16.mxu0 %v962_v7  ;;  %v2940_v7 = vld [vmem:[%s3721_s11 + $0x110] sm:$0xff] }
  0x65   : > { %2931 = vmatprep.subr.msk.bf16.mxu1 %vm352_vm0, %v1278_v8  ;;  %v1584_v8 = vpack.c.bf16 %v2975_v6, %v2975_v6  ;;  %v1433_v10 = vpack.c.bf16 %v2940_v7, %v2940_v7  ;;  %v3017_v6 = vld [vmem:[%s3721_s11 + $0x2e0] sm:$0xff]  ;;  %v3019_v7 = vld [vmem:[%s3721_s11 + $0x2f0] sm:$0xff] }
  0x67   : > { %v1587_v17 = vsel %vm352_vm0, %v1584_v8, 0  ;;  %v1436_v18 = vsel %vm352_vm0, %v1433_v10, 0  ;;  %v3033_v8 = vld [vmem:[%s3721_s11 + $0x218] sm:$0xff]  ;;  %v1886_v10 = vpack.c.bf16 %v3019_v7, %v3017_v6 }
  0x68   : > { %v2048_v11 = vpack.c.bf16 %v3033_v8, %v3033_v8 }
  0x69   : > { %2820 = vmatmul.mubr.msk.bf16.gmra.mrb[4].mxu0 %vm452_vm2, %v3853_v12 }
  0x6a   : > { %2843 = vmatmul.mubr.msk.bf16.gmra.mrb[4].mxu1 %vm452_vm2, %v3853_v12  ;;  %517 = vmatprep.mubr.bf16.mxu0 %v3569_v0 }
  0x6b   : > { %764 = vmatprep.mubr.bf16.mxu1 %v3569_v0 }
  0x71   : > { %2821 = vmatmul.mubr.msk.bf16.gmra.mrb[8].mxu0 %vm452_vm2, %v3868_v14 }
  0x72   : > { %2844 = vmatmul.mubr.msk.bf16.gmra.mrb[8].mxu1 %vm452_vm2, %v3868_v14  ;;  %527 = vmatprep.mubr.bf16.mxu0 %v3569_v0 }
  0x73   : > { %774 = vmatprep.mubr.bf16.mxu1 %v3569_v0 }
  0x79   : > { %2822 = vmatmul.mubr.msk.bf16.gmra.mrb[12].mxu0 %vm452_vm2, %v3879_v15 }
  0x7a   : > { %2845 = vmatmul.mubr.msk.bf16.gmra.mrb[12].mxu1 %vm452_vm2, %v3879_v15  ;;  %1010 = vmatprep.mubr.bf16.mxu0 %v3569_v0 }
  0x7b   : > { %859 = vmatprep.mubr.bf16.mxu1 %v3569_v0 }
  0x81   : > { %2886 = vmatmul.mubr.msk.bf16.vlgmr.msra.gmra.mrb[16].mxu0 %vm339_vm1, %v3738_v9 }
  0x82   : > { %2851 = vmatmul.mubr.msk.bf16.vlgmr.msra.gmra.mrb[0].mxu1 %vm339_vm1, %v3895_v22  ;;  %1052 = vmatpush1.bf16.msra.mxu0 %v961_v23  ;;  %v2963_v23 = vld [vmem:[%s3721_s11 + $0x220] sm:$0xff] }
  0x83   : > { %1286 = vmatpush1.bf16.msra.mxu1 %v1280_v28  ;;  %869 = vmatprep.mubr.bf16.mxu1 %v3569_v0  ;;  %v1575_v28 = vpack.c.bf16 %v2965_v24, %v2963_v23 }
  0x84   : > { %1020 = vmatprep.mubr.bf16.mxu0 %v3569_v0  ;;  %1053 = vmatprep.subr.bf16.mxu0 %v964_v29  ;;  %v3010_v29 = vld [vmem:[%s3721_s11 + $0x2a8] sm:$0xff] }
  0x85   : > { %1358 = vmatprep.subr.bf16.mxu1 %v1269_v32  ;;  %v2969_v32 = vld [vmem:[%s3721_s11 + $0x250] sm:$0xff]  ;;  %v1883_v38 = vpack.c.bf16 %v3012_v30, %v3010_v29 }
  0x86   : > { %1054 = vmatpush1.bf16.msra.mxu0 %v963_v33  ;;  %v1894_v33 = vsel %vm352_vm0, %v1891_v25, 0 }
  0x87   : > { %1055 = vmatprep.subr.bf16.mxu0 %v966_v34  ;;  %v1578_v34 = vpack.c.bf16 %v2970_v27, %v2968_v26  ;;  %v2505_v26 = vpack.c.bf16 %v3114_v21, %v3114_v21 }
  0x89   : > { %2887 = vmatmul.mubr.msk.bf16.gmra.mrb[20].mxu0 %vm339_vm1, %v3768_v35 }
  0x8a   : > { %2852 = vmatmul.mubr.msk.bf16.gmra.mrb[4].mxu1 %vm339_vm1, %v3916_v39  ;;  %1030 = vmatprep.mubr.bf16.mxu0 %v3569_v0 }
  0x8b   : > { %879 = vmatprep.mubr.bf16.mxu1 %v3569_v0  ;;  %1056 = vmatpush1.bf16.msra.mxu0 %v965_v40  ;;  %v1577_v40 = vpack.c.bf16 %v2969_v32, %v2967_v31 }
  0x8c   : > { %2896 = vmatprep.subr.msk.bf16.mxu0 %vm352_vm0, %v1127_v41  ;;  %v1580_v41 = vpack.c.bf16 %v2974_v37, %v2972_v36 }
  0x91   : > { %2888 = vmatmul.mubr.msk.bf16.gmra.mrb[24].mxu0 %vm339_vm1, %v3791_v53 }
  0x92   : > { %2853 = vmatmul.mubr.msk.bf16.gmra.mrb[8].mxu1 %vm339_vm1, %v3928_v42  ;;  %1040 = vmatprep.mubr.bf16.mxu0 %v3569_v0 }
  0x93   : > { %889 = vmatprep.mubr.bf16.mxu1 %v3569_v0 }
  0x99   : > { %2889 = vmatmul.mubr.msk.bf16.gmra.mrb[28].mxu0 %vm339_vm1, %v3803_v54 }
  0x9a   : > { %2854 = vmatmul.mubr.msk.bf16.gmra.mrb[12].mxu1 %vm339_vm1, %v3939_v43  ;;  %1083 = vmatprep.mubr.bf16.mxu0 %v3569_v0 }
  0x9b   : > { %1317 = vmatprep.mubr.bf16.mxu1 %v3569_v0 }
  0xa1   : > { %2890 = vmatmul.mubr.msk.bf16.vlgmr.msra.gmra.mrb[16].mxu0 %vm452_vm2, %v3828_v63 }
  0xa2   : > { %2932 = vmatmul.mubr.msk.bf16.vlgmr.msra.gmra.mrb[16].mxu1 %vm339_vm1, %v3738_v9  ;;  %1135 = vmatpush1.bf16.msra.mxu0 %v1129_v51  ;;  %v3009_v51 = vld [vmem:[%s3721_s11 + $0x2a0] sm:$0xff] }
  0xa3   : > { %1359 = vmatpush1.bf16.msra.mxu1 %v1268_v52  ;;  %1093 = vmatprep.mubr.bf16.mxu0 %v3569_v0  ;;  %v3011_v52 = vld [vmem:[%s3721_s11 + $0x2b0] sm:$0xff] }
  0xa4   : > { %1327 = vmatprep.mubr.bf16.mxu1 %v3569_v0  ;;  %1360 = vmatprep.subr.bf16.mxu1 %v1271_v55  ;;  %v3014_v55 = vld [vmem:[%s3721_s11 + $0x2c8] sm:$0xff]  ;;  %v1882_v59 = vpack.c.bf16 %v3011_v52, %v3009_v51  ;;  %v3062_v51 = vld [vmem:[%s3721_s11 + $0x358] sm:$0xff] }
  0xa5   : > { %2977 = vmatprep.subr.msk.bf16.mxu0 %vm352_vm0, %v1585_v60  ;;  %v1885_v60 = vpack.c.bf16 %v3016_v56, %v3014_v55 }
  0xa7   : > { %1361 = vmatpush1.bf16.msra.mxu1 %v1270_v61  ;;  %v3013_v61 = vld [vmem:[%s3721_s11 + $0x2c0] sm:$0xff] }
  0xa8   : > { %1362 = vmatprep.subr.bf16.mxu1 %v1273_v62  ;;  %v3015_v62 = vld [vmem:[%s3721_s11 + $0x2d0] sm:$0xff] }
  0xa9   : > { %2891 = vmatmul.mubr.msk.bf16.gmra.mrb[20].mxu0 %vm452_vm2, %v3853_v12 }
  0xaa   : > { %2933 = vmatmul.mubr.msk.bf16.gmra.mrb[20].mxu1 %vm339_vm1, %v3768_v35  ;;  %1103 = vmatprep.mubr.bf16.mxu0 %v3569_v0 }
  0xab   : > { %1337 = vmatprep.mubr.bf16.mxu1 %v3569_v0  ;;  %1363 = vmatpush1.bf16.msra.mxu1 %v1272_v4  ;;  %v1884_v4 = vpack.c.bf16 %v3015_v62, %v3013_v61  ;;  %v3059_v61 = vld [vmem:[%s3721_s11 + $0x340] sm:$0xff]  ;;  %v3061_v62 = vld [vmem:[%s3721_s11 + $0x350] sm:$0xff] }
  0xac   : > { %2942 = vmatprep.subr.msk.bf16.mxu1 %vm352_vm0, %v1434_v5  ;;  %v1887_v5 = vpack.c.bf16 %v3020_v2, %v3018_v1  ;;  %v2191_v8 = vpack.c.bf16 %v3061_v62, %v3059_v61 }
  0xb1   : > { %2892 = vmatmul.mubr.msk.bf16.gmra.mrb[24].mxu0 %vm452_vm2, %v3868_v14 }
  0xb2   : > { %2934 = vmatmul.mubr.msk.bf16.gmra.mrb[24].mxu1 %vm339_vm1, %v3791_v53  ;;  %1113 = vmatprep.mubr.bf16.mxu0 %v3569_v0 }
  0xb3   : > { %1347 = vmatprep.mubr.bf16.mxu1 %v3569_v0 }
  0xb9   : > { %2893 = vmatmul.mubr.msk.bf16.gmra.mrb[28].mxu0 %vm452_vm2, %v3879_v15 }
  0xba   : > { %2935 = vmatmul.mubr.msk.bf16.gmra.mrb[28].mxu1 %vm339_vm1, %v3803_v54  ;;  %1166 = vmatprep.mubr.bf16.mxu0 %v3569_v0 }
  0xbb   : > { %1390 = vmatprep.mubr.bf16.mxu1 %v3569_v0 }
  0xc1   : > { %2897 = vmatmul.mubr.msk.bf16.vlgmr.msra.gmra.mrb[16].mxu0 %vm339_vm1, %v3895_v22 }
  0xc2   : > { %2936 = vmatmul.mubr.msk.bf16.vlgmr.msra.gmra.mrb[16].mxu1 %vm452_vm2, %v3828_v63  ;;  %1593 = vmatpush1.bf16.msra.mxu0 %v1587_v17  ;;  %v2198_v17 = vpack.c.bf16 %v3067_v13, %v3067_v13 }
  0xc3   : > { %1442 = vmatpush1.bf16.msra.mxu1 %v1436_v18  ;;  %1176 = vmatprep.mubr.bf16.mxu0 %v3569_v0  ;;  %v2047_v18 = vpack.c.bf16 %v3032_v16, %v3032_v16  ;;  %v3065_v16 = vld [vmem:[%s3721_s11 + $0x370] sm:$0xff] }
  0xc4   : > { %1400 = vmatprep.mubr.bf16.mxu1 %v3569_v0  ;;  %1665 = vmatprep.subr.bf16.mxu0 %v1576_v19  ;;  %v3056_v19 = vld [vmem:[%s3721_s11 + $0x328] sm:$0xff]  ;;  %v2201_v23 = vsel %vm352_vm0, %v2198_v17, 0 }
  0xc5   : > { %3023 = vmatprep.subr.msk.bf16.mxu1 %vm352_vm0, %v1892_v20  ;;  %v3058_v20 = vld [vmem:[%s3721_s11 + $0x338] sm:$0xff]  ;;  %v2050_v24 = vsel %vm352_vm0, %v2047_v18, 0 }
  0xc6   : > { %v2190_v25 = vpack.c.bf16 %v3058_v20, %v3056_v19  ;;  %v3079_v19 = vld [vmem:[%s3721_s11 + $0x298] sm:$0xff] }
  0xc7   : > { %v4119_v27 = vpop.permute.xlu0 %540 }
  0xc9   : > { %2898 = vmatmul.mubr.msk.bf16.gmra.mrb[20].mxu0 %vm339_vm1, %v3916_v39 }
  0xca   : > { %2937 = vmatmul.mubr.msk.bf16.gmra.mrb[20].mxu1 %vm452_vm2, %v3853_v12  ;;  %1186 = vmatprep.mubr.bf16.mxu0 %v3569_v0 }
  0xcb   : > { %1410 = vmatprep.mubr.bf16.mxu1 %v3569_v0 }
  0xcc   : > { %v4127_v29 = vpop.permute.xlu0 %545 }
  0xd0   : > { %v4175_v7 = vpop.permute.xlu0 %560 }
  0xd1   : > { %2899 = vmatmul.mubr.msk.bf16.gmra.mrb[24].mxu0 %vm339_vm1, %v3928_v42 }
  0xd2   : > { %2938 = vmatmul.mubr.msk.bf16.gmra.mrb[24].mxu1 %vm452_vm2, %v3868_v14  ;;  %1196 = vmatprep.mubr.bf16.mxu0 %v3569_v0 }
  0xd3   : > { %1420 = vmatprep.mubr.bf16.mxu1 %v3569_v0 }
  0xd9   : > { %2900 = vmatmul.mubr.msk.bf16.gmra.mrb[28].mxu0 %vm339_vm1, %v3939_v43 }
  0xda   : > { %2939 = vmatmul.mubr.msk.bf16.gmra.mrb[28].mxu1 %vm452_vm2, %v3879_v15  ;;  %1624 = vmatprep.mubr.bf16.mxu0 %v3569_v0 }
  0xdb   : > { %1473 = vmatprep.mubr.bf16.mxu1 %v3569_v0 }
  0xe1   : > { %2978 = vmatmul.mubr.msk.bf16.vlgmr.msra.gmra.mrb[32].mxu0 %vm339_vm1, %v3738_v9 }
  0xe2   : > { %2943 = vmatmul.mubr.msk.bf16.vlgmr.msra.gmra.mrb[16].mxu1 %vm339_vm1, %v3895_v22  ;;  %1666 = vmatpush1.bf16.msra.mxu0 %v1575_v28 }
  0xe3   : > { %1900 = vmatpush1.bf16.msra.mxu1 %v1894_v33  ;;  %1483 = vmatprep.mubr.bf16.mxu1 %v3569_v0 }
  0xe4   : > { %1634 = vmatprep.mubr.bf16.mxu0 %v3569_v0  ;;  %1667 = vmatprep.subr.bf16.mxu0 %v1578_v34  ;;  %v4131_v34 = vpop.permute.xlu1 %550 }
  0xe5   : > { %1972 = vmatprep.subr.bf16.mxu1 %v1883_v38 }
  0xe6   : > { %1668 = vmatpush1.bf16.msra.mxu0 %v1577_v40  ;;  %v3113_v40 = vld [vmem:[%s3721_s11 + $0x310] sm:$0xff] }
  0xe7   : > { %1669 = vmatprep.subr.bf16.mxu0 %v1580_v41  ;;  %v3055_v41 = vld [vmem:[%s3721_s11 + $0x320] sm:$0xff] }
  0xe8   : > { %v4152_v46 = vpop.permute.xlu1 %555  ;;  %v2189_v56 = vpack.c.bf16 %v3057_v44, %v3055_v41 }
  0xe9   : > { %2979 = vmatmul.mubr.msk.bf16.gmra.mrb[36].mxu0 %vm339_vm1, %v3768_v35 }
  0xea   : > { %2944 = vmatmul.mubr.msk.bf16.gmra.mrb[20].mxu1 %vm339_vm1, %v3916_v39  ;;  %1644 = vmatprep.mubr.bf16.mxu0 %v3569_v0 }
  0xeb   : > { %1493 = vmatprep.mubr.bf16.mxu1 %v3569_v0  ;;  %1670 = vmatpush1.bf16.msra.mxu0 %v1579_v47  ;;  %v2504_v47 = vpack.c.bf16 %v3113_v40, %v3113_v40 }
  0xec   : > { %2988 = vmatprep.subr.msk.bf16.mxu0 %vm352_vm0, %v1741_v48  ;;  %v4178_v13 = vpop.permute.xlu1 %565 }
  0xed   : > { %v2507_v2 = vsel %vm352_vm0, %v2504_v47, 0 }
  0xf1   : > { %2980 = vmatmul.mubr.msk.bf16.gmra.mrb[40].mxu0 %vm339_vm1, %v3791_v53 }
  0xf2   : > { %2945 = vmatmul.mubr.msk.bf16.gmra.mrb[24].mxu1 %vm339_vm1, %v3928_v42  ;;  %1654 = vmatprep.mubr.bf16.mxu0 %v3569_v0 }
  0xf3   : > { %1503 = vmatprep.mubr.bf16.mxu1 %v3569_v0 }
  0xf9   : > { %2981 = vmatmul.mubr.msk.bf16.gmra.mrb[44].mxu0 %vm339_vm1, %v3803_v54 }
  0xfa   : > { %2946 = vmatmul.mubr.msk.bf16.gmra.mrb[28].mxu1 %vm339_vm1, %v3939_v43  ;;  %1697 = vmatprep.mubr.bf16.mxu0 %v3569_v0 }
  0xfb   : > { %1931 = vmatprep.mubr.bf16.mxu1 %v3569_v0 }
 0x101   : > { %2982 = vmatmul.mubr.msk.bf16.vlgmr.msra.gmra.mrb[32].mxu0 %vm452_vm2, %v3828_v63 }
 0x102   : > { %3024 = vmatmul.mubr.msk.bf16.vlgmr.msra.gmra.mrb[32].mxu1 %vm339_vm1, %v3738_v9  ;;  %1749 = vmatpush1.bf16.msra.mxu0 %v1743_v58  ;;  %v3104_v58 = vld [vmem:[%s3721_s11 + $0x3b8] sm:$0xff] }
 0x103   : > { %1973 = vmatpush1.bf16.msra.mxu1 %v1882_v59  ;;  %1707 = vmatprep.mubr.bf16.mxu0 %v3569_v0  ;;  %v2497_v6 = vpack.c.bf16 %v3104_v58, %v3102_v57  ;;  %v3103_v57 = vld [vmem:[%s3721_s11 + $0x3b0] sm:$0xff] }
 0x104   : > { %1941 = vmatprep.mubr.bf16.mxu1 %v3569_v0  ;;  %1974 = vmatprep.subr.bf16.mxu1 %v1885_v60 }
 0x105   : > { %3069 = vmatprep.subr.msk.bf16.mxu0 %vm352_vm0, %v2199_v3  ;;  %v2192_v3 = vpack.c.bf16 %v3062_v51, %v3060_v50  ;;  %v3078_v51 = vld [vmem:[%s3721_s11 + $0x290] sm:$0xff] }
 0x107   : > { %1975 = vmatpush1.bf16.msra.mxu1 %v1884_v4  ;;  %v3064_v4 = vld [vmem:[%s3721_s11 + $0x368] sm:$0xff] }
 0x108   : > { %1976 = vmatprep.subr.bf16.mxu1 %v1887_v5  ;;  %v3066_v5 = vld [vmem:[%s3721_s11 + $0x378] sm:$0xff] }
 0x109   : > { %2983 = vmatmul.mubr.msk.bf16.gmra.mrb[36].mxu0 %vm452_vm2, %v3853_v12 }
 0x10a   : > { %3025 = vmatmul.mubr.msk.bf16.gmra.mrb[36].mxu1 %vm339_vm1, %v3768_v35  ;;  %1717 = vmatprep.mubr.bf16.mxu0 %v3569_v0 }
 0x10b   : > { %1951 = vmatprep.mubr.bf16.mxu1 %v3569_v0  ;;  %1977 = vmatpush1.bf16.msra.mxu1 %v1886_v10  ;;  %v2194_v10 = vpack.c.bf16 %v3066_v5, %v3064_v4 }
 0x10c   : > { %3034 = vmatprep.subr.msk.bf16.mxu1 %vm352_vm0, %v2048_v11 }
 0x111   : > { %2984 = vmatmul.mubr.msk.bf16.gmra.mrb[40].mxu0 %vm452_vm2, %v3868_v14 }
 0x112   : > { %3026 = vmatmul.mubr.msk.bf16.gmra.mrb[40].mxu1 %vm339_vm1, %v3791_v53  ;;  %1727 = vmatprep.mubr.bf16.mxu0 %v3569_v0 }
 0x113   : > { %1961 = vmatprep.mubr.bf16.mxu1 %v3569_v0 }
 0x119   : > { %2985 = vmatmul.mubr.msk.bf16.gmra.mrb[44].mxu0 %vm452_vm2, %v3879_v15 }
 0x11a   : > { %3027 = vmatmul.mubr.msk.bf16.gmra.mrb[44].mxu1 %vm339_vm1, %v3803_v54  ;;  %1780 = vmatprep.mubr.bf16.mxu0 %v3569_v0 }
 0x11b   : > { %2004 = vmatprep.mubr.bf16.mxu1 %v3569_v0 }
 0x121   : > { %2989 = vmatmul.mubr.msk.bf16.vlgmr.msra.gmra.mrb[32].mxu0 %vm339_vm1, %v3895_v22 }
 0x122   : > { %3028 = vmatmul.mubr.msk.bf16.vlgmr.msra.gmra.mrb[32].mxu1 %vm452_vm2, %v3828_v63  ;;  %2207 = vmatpush1.bf16.msra.mxu0 %v2201_v23 }
 0x123   : > { %2056 = vmatpush1.bf16.msra.mxu1 %v2050_v24  ;;  %1790 = vmatprep.mubr.bf16.mxu0 %v3569_v0 }
 0x124   : > { %2014 = vmatprep.mubr.bf16.mxu1 %v3569_v0  ;;  %2279 = vmatprep.subr.bf16.mxu0 %v2190_v25 }
 0x125   : > { %3115 = vmatprep.subr.msk.bf16.mxu1 %vm352_vm0, %v2505_v26 }
 0x129   : > { %2990 = vmatmul.mubr.msk.bf16.gmra.mrb[36].mxu0 %vm339_vm1, %v3916_v39 }
 0x12a   : > { %3029 = vmatmul.mubr.msk.bf16.gmra.mrb[36].mxu1 %vm452_vm2, %v3853_v12  ;;  %1800 = vmatprep.mubr.bf16.mxu0 %v3569_v0 }
 0x12b   : > { %2024 = vmatprep.mubr.bf16.mxu1 %v3569_v0 }
 0x131   : > { %2991 = vmatmul.mubr.msk.bf16.gmra.mrb[40].mxu0 %vm339_vm1, %v3928_v42 }
 0x132   : > { %3030 = vmatmul.mubr.msk.bf16.gmra.mrb[40].mxu1 %vm452_vm2, %v3868_v14  ;;  %1810 = vmatprep.mubr.bf16.mxu0 %v3569_v0 }
 0x133   : > { %2034 = vmatprep.mubr.bf16.mxu1 %v3569_v0 }
 0x134   : > { %v499_v28 = vpop.f32.mrb[0].mxu0 }
 0x135   : > { %v578_v30 = vadd.f32 %v4119_v27, %v499_v28  ;;  %v501_v31 = vpop.f32.mrb[1].mxu0  ;;  %v2355_v28 = vpack.c.bf16 %v3079_v19, %v3079_v19  ;;  %v3109_v19 = vld [vmem:[%s3721_s11 + $0x3e0] sm:$0xff] }
 0x136   : > { %v579_v32 = vadd.f32 %v4119_v27, %v501_v31  ;;  %v503_v33 = vpop.f32.mrb[2].mxu0 }
 0x137   : > { %594 = vst [vmem:[%s4135_s24] sm:$0xff] %v578_v30  ;;  %v580_v36 = vadd.f32 %v4127_v29, %v503_v33  ;;  %v505_v37 = vpop.f32.mrb[3].mxu0  ;;  %v4196_v30 = vpop.permute.xlu0 %570 }
 0x138   : > { %595 = vst [vmem:[%s4135_s24 + $0x8] sm:$0xff] %v579_v32  ;;  %v581_v38 = vadd.f32 %v4127_v29, %v505_v37  ;;  %v4200_v32 = vpop.permute.xlu1 %575 }
 0x139   : > { %596 = vst [vmem:[%s4135_s24 + $0x10] sm:$0xff] %v580_v36  ;;  %2992 = vmatmul.mubr.msk.bf16.gmra.mrb[44].mxu0 %vm339_vm1, %v3939_v43 }
 0x13a   : > { %597 = vst [vmem:[%s4135_s24 + $0x18] sm:$0xff] %v581_v38  ;;  %3031 = vmatmul.mubr.msk.bf16.gmra.mrb[44].mxu1 %vm452_vm2, %v3879_v15  ;;  %2238 = vmatprep.mubr.bf16.mxu0 %v3569_v0 }
 0x13b   : > { %2087 = vmatprep.mubr.bf16.mxu1 %v3569_v0 }
 0x13c   : > { %v509_v45 = vpop.f32.mrb[4].mxu0 }
 0x13d   : > { %v582_v48 = vadd.f32 %v4131_v34, %v509_v45  ;;  %v511_v49 = vpop.f32.mrb[5].mxu0 }
 0x13e   : > { %v583_v52 = vadd.f32 %v4131_v34, %v511_v49  ;;  %v513_v55 = vpop.f32.mrb[6].mxu0 }
 0x13f   : > { %598 = vst [vmem:[%s4135_s24 + $0x20] sm:$0xff] %v582_v48  ;;  %v584_v59 = vadd.f32 %v4152_v46, %v513_v55  ;;  %v515_v60 = vpop.f32.mrb[7].mxu0  ;;  %v2354_v55 = vpack.c.bf16 %v3078_v51, %v3078_v51 }
 0x140   : > { %599 = vst [vmem:[%s4135_s24 + $0x28] sm:$0xff] %v583_v52  ;;  %v585_v1 = vadd.f32 %v4152_v46, %v515_v60  ;;  %v3108_v60 = vld [vmem:[%s3721_s11 + $0x3d8] sm:$0xff] }
 0x141   : > { %600 = vst [vmem:[%s4135_s24 + $0x30] sm:$0xff] %v584_v59  ;;  %3070 = vmatmul.mubr.msk.bf16.vlgmr.msra.gmra.mrb[48].mxu0 %vm339_vm1, %v3738_v9  ;;  %v3063_v9 = vld [vmem:[%s3721_s11 + $0x360] sm:$0xff]  ;;  %v3106_v59 = vld [vmem:[%s3721_s11 + $0x3c8] sm:$0xff] }
 0x142   : > { %601 = vst [vmem:[%s4135_s24 + $0x38] sm:$0xff] %v585_v1  ;;  %3035 = vmatmul.mubr.msk.bf16.vlgmr.msra.gmra.mrb[32].mxu1 %vm339_vm1, %v3895_v22  ;;  %2280 = vmatpush1.bf16.msra.mxu0 %v2189_v56  ;;  %v2193_v25 = vpack.c.bf16 %v3065_v16, %v3063_v9  ;;  %v3101_v56 = vld [vmem:[%s3721_s11 + $0x3a0] sm:$0xff]  ;;  %v3110_v9 = vld [vmem:[%s3721_s11 + $0x3e8] sm:$0xff]  ;;  %v3112_v16 = vld [vmem:[%s3721_s11 + $0x3f8] sm:$0xff] }
 0x143   : > { %2513 = vmatpush1.bf16.msra.mxu1 %v2507_v2  ;;  %2097 = vmatprep.mubr.bf16.mxu1 %v3569_v0  ;;  %v2357_v2 = vsel %vm352_vm0, %v2354_v55, 0 }
 0x144   : > { %v519_v11 = vpop.f32.mrb[8].mxu0  ;;  %2248 = vmatprep.mubr.bf16.mxu0 %v3569_v0  ;;  %2281 = vmatprep.subr.bf16.mxu0 %v2192_v3  ;;  %v2496_v3 = vpack.c.bf16 %v3103_v57, %v3101_v56 }
 0x145   : > { %v586_v17 = vadd.f32 %v4175_v7, %v519_v11  ;;  %v521_v18 = vpop.f32.mrb[9].mxu0  ;;  %2585 = vmatprep.subr.bf16.mxu1 %v2497_v6  ;;  %v2499_v6 = vpack.c.bf16 %v3108_v60, %v3106_v59 }
 0x146   : > { %v587_v20 = vadd.f32 %v4175_v7, %v521_v18  ;;  %v523_v21 = vpop.f32.mrb[10].mxu0  ;;  %2282 = vmatpush1.bf16.msra.mxu0 %v2191_v8  ;;  %v3105_v8 = vld [vmem:[%s3721_s11 + $0x3c0] sm:$0xff]  ;;  %v2501_v18 = vpack.c.bf16 %v3112_v16, %v3110_v9 }
 0x147   : > { %602 = vst [vmem:[%s4135_s24 + $0x40] sm:$0xff] %v586_v17  ;;  %v588_v23 = vadd.f32 %v4178_v13, %v523_v21  ;;  %v525_v24 = vpop.f32.mrb[11].mxu0  ;;  %2283 = vmatprep.subr.bf16.mxu0 %v2194_v10  ;;  %v3107_v10 = vld [vmem:[%s3721_s11 + $0x3d0] sm:$0xff] }
 0x148   : > { %603 = vst [vmem:[%s4135_s24 + $0x48] sm:$0xff] %v587_v20  ;;  %v589_v26 = vadd.f32 %v4178_v13, %v525_v24  ;;  %v2498_v17 = vpack.c.bf16 %v3107_v10, %v3105_v8  ;;  %v3111_v20 = vld [vmem:[%s3721_s11 + $0x3f0] sm:$0xff]  ;;  %s2707_s11 = sshll.u32 %s4135_s24, 4  ;;  %s4506_s11 = int_to_ptr.vmem [resolvable:$true] %s2707_s11 }
 0x149   : > { %604 = vst [vmem:[%s4135_s24 + $0x50] sm:$0xff] %v588_v23  ;;  %3071 = vmatmul.mubr.msk.bf16.gmra.mrb[52].mxu0 %vm339_vm1, %v3768_v35  ;;  %s3482_s15 = scalar_lea.vmem %s4506_s11, 16384  ;;  %p3489_p6 = scmp.lt.s32.totalorder %s4506_s11, %s3487_s27 }
 0x14a   : > { %605 = vst [vmem:[%s4135_s24 + $0x58] sm:$0xff] %v589_v26  ;;  %3036 = vmatmul.mubr.msk.bf16.gmra.mrb[36].mxu1 %vm339_vm1, %v3916_v39  ;;  %2258 = vmatprep.mubr.bf16.mxu0 %v3569_v0  ;;  %p3483_p8 = scmp.ne.s32.totalorder %s4506_s11, %s3482_s15  ;;  %p3490_p13 = scmp.lt.s32.totalorder %s3488_s10, %s3482_s15 }
 0x14b   : > { %2107 = vmatprep.mubr.bf16.mxu1 %v3569_v0  ;;  %2284 = vmatpush1.bf16.msra.mxu0 %v2193_v25 }
 0x14c   : > { %v529_v31 = vpop.f32.mrb[12].mxu0  ;;  %3080 = vmatprep.subr.msk.bf16.mxu0 %vm352_vm0, %v2355_v28  ;;  %v2500_v28 = vpack.c.bf16 %v3111_v20, %v3109_v19  ;;  %p3484_p11 = pnand %p3483_p8, %p4574_p9  ;;  %p3491_p2 = por %p3490_p13, %p3489_p6 }
 0x14d   : > { %v590_v35 = vadd.f32 %v4196_v30, %v529_v31  ;;  %v531_v33 = vpop.f32.mrb[13].mxu0 }
 0x14e   : > { %v591_v36 = vadd.f32 %v4196_v30, %v531_v33  ;;  %v533_v37 = vpop.f32.mrb[14].mxu0  ;;  %p3485_p0 = pneg %p3484_p11 }
 0x14f   : > { %606 = vst [vmem:[%s4135_s24 + $0x60] sm:$0xff] %v590_v35  ;;  %v592_v38 = vadd.f32 %v4200_v32, %v533_v37  ;;  %v535_v40 = vpop.f32.mrb[15].mxu0 }
 0x150   : > { %607 = vst [vmem:[%s4135_s24 + $0x68] sm:$0xff] %v591_v36  ;;  %v593_v41 = vadd.f32 %v4200_v32, %v535_v40  ;;  %p3492_p5 = pnand %p3491_p2, %p3485_p0 }
 0x151   : > { %608 = vst [vmem:[%s4135_s24 + $0x70] sm:$0xff] %v592_v38  ;;  %3072 = vmatmul.mubr.msk.bf16.gmra.mrb[56].mxu0 %vm339_vm1, %v3791_v53 }
 0x152   : > { %609 = vst [vmem:[%s4135_s24 + $0x78] sm:$0xff] %v593_v41  ;;  %3037 = vmatmul.mubr.msk.bf16.gmra.mrb[40].mxu1 %vm339_vm1, %v3928_v42  ;;  %2268 = vmatprep.mubr.bf16.mxu0 %v3569_v0 }
 0x153   : > { %2117 = vmatprep.mubr.bf16.mxu1 %v3569_v0 }
 0x155   : > { %v861_v44 = vpop.f32.mrb[0].mxu1 }
 0x156   : > { %v916_v45 = vadd.f32 %v861_v44, %v4119_v27  ;;  %v863_v47 = vpop.f32.mrb[1].mxu1 }
 0x157   : > { %v917_v48 = vadd.f32 %v863_v47, %v4119_v27  ;;  %v865_v49 = vpop.f32.mrb[2].mxu1 }
 0x158   : > { %2855 = vst [vmem:[%s4135_s24 + $0x80] sm:$0xff] %v916_v45  ;;  %v918_v53 = vadd.f32 %v865_v49, %v4127_v29  ;;  %v867_v50 = vpop.f32.mrb[3].mxu1 }
 0x159   : > { %2856 = vst [vmem:[%s4135_s24 + $0x88] sm:$0xff] %v917_v48  ;;  %v919_v52 = vadd.f32 %v867_v50, %v4127_v29  ;;  %3073 = vmatmul.mubr.msk.bf16.gmra.mrb[60].mxu0 %vm339_vm1, %v3803_v54 }
 0x15a   : > { %2857 = vst [vmem:[%s4135_s24 + $0x90] sm:$0xff] %v918_v53  ;;  %3038 = vmatmul.mubr.msk.bf16.gmra.mrb[44].mxu1 %vm339_vm1, %v3939_v43  ;;  %2311 = vmatprep.mubr.bf16.mxu0 %v3569_v0 }
 0x15b   : > { %2858 = vst [vmem:[%s4135_s24 + $0x98] sm:$0xff] %v919_v52  ;;  %2544 = vmatprep.mubr.bf16.mxu1 %v3569_v0 }
 0x15d   : > { %v871_v58 = vpop.f32.mrb[4].mxu1 }
 0x15e   : > { %v920_v54 = vadd.f32 %v871_v58, %v4131_v34  ;;  %v873_v61 = vpop.f32.mrb[5].mxu1 }
 0x15f   : > { %v921_v62 = vadd.f32 %v873_v61, %v4131_v34  ;;  %v875_v1 = vpop.f32.mrb[6].mxu1 }
 0x160   : > { %2859 = vst [vmem:[%s4135_s24 + $0xa0] sm:$0xff] %v920_v54  ;;  %v922_v4 = vadd.f32 %v875_v1, %v4152_v46  ;;  %v877_v5 = vpop.f32.mrb[7].mxu1 }
 0x161   : > { %2860 = vst [vmem:[%s4135_s24 + $0xa8] sm:$0xff] %v921_v62  ;;  %v923_v11 = vadd.f32 %v877_v5, %v4152_v46  ;;  %3074 = vmatmul.mubr.msk.bf16.vlgmr.msra.gmra.mrb[48].mxu0 %vm452_vm2, %v3828_v63 }
 0x162   : > { %2861 = vst [vmem:[%s4135_s24 + $0xb0] sm:$0xff] %v922_v4  ;;  %3116 = vmatmul.mubr.msk.bf16.vlgmr.msra.gmra.mrb[48].mxu1 %vm339_vm1, %v3895_v22  ;;  %2363 = vmatpush1.bf16.msra.mxu0 %v2357_v2 }
 0x163   : > { %2862 = vst [vmem:[%s4135_s24 + $0xb8] sm:$0xff] %v923_v11  ;;  %2586 = vmatpush1.bf16.msra.mxu1 %v2496_v3  ;;  %2321 = vmatprep.mubr.bf16.mxu0 %v3569_v0 }
 0x164   : > { %2554 = vmatprep.mubr.bf16.mxu1 %v3569_v0  ;;  %2587 = vmatprep.subr.bf16.mxu1 %v2499_v6 }
 0x165   : > { %v881_v21 = vpop.f32.mrb[8].mxu1 }
 0x166   : > { %v924_v23 = vadd.f32 %v881_v21, %v4175_v7  ;;  %v883_v24 = vpop.f32.mrb[9].mxu1 }
 0x167   : > { %v925_v25 = vadd.f32 %v883_v24, %v4175_v7  ;;  %v885_v26 = vpop.f32.mrb[10].mxu1  ;;  %2588 = vmatpush1.bf16.msra.mxu1 %v2498_v17 }
 0x168   : > { %2863 = vst [vmem:[%s4135_s24 + $0xc0] sm:$0xff] %v924_v23  ;;  %v926_v31 = vadd.f32 %v885_v26, %v4178_v13  ;;  %v887_v35 = vpop.f32.mrb[11].mxu1  ;;  %2589 = vmatprep.subr.bf16.mxu1 %v2501_v18 }
 0x169   : > { %2864 = vst [vmem:[%s4135_s24 + $0xc8] sm:$0xff] %v925_v25  ;;  %v927_v33 = vadd.f32 %v887_v35, %v4178_v13  ;;  %3075 = vmatmul.mubr.msk.bf16.gmra.mrb[52].mxu0 %vm452_vm2, %v3853_v12 }
 0x16a   : > { %2865 = vst [vmem:[%s4135_s24 + $0xd0] sm:$0xff] %v926_v31  ;;  %3117 = vmatmul.mubr.msk.bf16.gmra.mrb[52].mxu1 %vm339_vm1, %v3916_v39  ;;  %2331 = vmatprep.mubr.bf16.mxu0 %v3569_v0 }
 0x16b   : > { %2866 = vst [vmem:[%s4135_s24 + $0xd8] sm:$0xff] %v927_v33  ;;  %2564 = vmatprep.mubr.bf16.mxu1 %v3569_v0  ;;  %2590 = vmatpush1.bf16.msra.mxu1 %v2500_v28 }
 0x16d   : > { %v891_v36 = vpop.f32.mrb[12].mxu1 }
 0x16e   : > { %v928_v37 = vadd.f32 %v891_v36, %v4196_v30  ;;  %v893_v38 = vpop.f32.mrb[13].mxu1 }
 0x16f   : > { %v929_v40 = vadd.f32 %v893_v38, %v4196_v30  ;;  %v895_v41 = vpop.f32.mrb[14].mxu1 }
 0x170   : > { %2867 = vst [vmem:[%s4135_s24 + $0xe0] sm:$0xff] %v928_v37  ;;  %v930_v44 = vadd.f32 %v895_v41, %v4200_v32  ;;  %v897_v45 = vpop.f32.mrb[15].mxu1 }
 0x171   : > { %2868 = vst [vmem:[%s4135_s24 + $0xe8] sm:$0xff] %v929_v40  ;;  %v931_v47 = vadd.f32 %v897_v45, %v4200_v32  ;;  %3076 = vmatmul.mubr.msk.bf16.gmra.mrb[56].mxu0 %vm452_vm2, %v3868_v14 }
 0x172   : > { %2869 = vst [vmem:[%s4135_s24 + $0xf0] sm:$0xff] %v930_v44  ;;  %3118 = vmatmul.mubr.msk.bf16.gmra.mrb[56].mxu1 %vm339_vm1, %v3928_v42  ;;  %2341 = vmatprep.mubr.bf16.mxu0 %v3569_v0 }
 0x173   : > { %2870 = vst [vmem:[%s4135_s24 + $0xf8] sm:$0xff] %v931_v47  ;;  %2574 = vmatprep.mubr.bf16.mxu1 %v3569_v0 }
 0x179   : > { %3077 = vmatmul.mubr.msk.bf16.gmra.mrb[60].mxu0 %vm452_vm2, %v3879_v15 }
 0x17a   : > { %3119 = vmatmul.mubr.msk.bf16.gmra.mrb[60].mxu1 %vm339_vm1, %v3939_v43  ;;  %2394 = vmatprep.mubr.bf16.mxu0 %v3569_v0 }
 0x17b   : > { %2617 = vmatprep.mubr.bf16.mxu1 %v3569_v0 }
 0x181   : > { %3081 = vmatmul.mubr.msk.bf16.vlgmr.msra.gmra.mrb[48].mxu0 %vm339_vm1, %v3895_v22 }
 0x182   : > { %3120 = vmatmul.mubr.msk.bf16.vlgmr.msra.gmra.mrb[48].mxu1 %vm452_vm2, %v3828_v63  ;;  %2404 = vmatprep.mubr.bf16.mxu0 %v3569_v0 }
 0x183   : > { %2627 = vmatprep.mubr.bf16.mxu1 %v3569_v0 }
 0x189   : > { %3082 = vmatmul.mubr.msk.bf16.gmra.mrb[52].mxu0 %vm339_vm1, %v3916_v39 }
 0x18a   : > { %3121 = vmatmul.mubr.msk.bf16.gmra.mrb[52].mxu1 %vm452_vm2, %v3853_v12  ;;  %2414 = vmatprep.mubr.bf16.mxu0 %v3569_v0 }
 0x18b   : > { %2637 = vmatprep.mubr.bf16.mxu1 %v3569_v0 }
 0x191   : > { %3083 = vmatmul.mubr.msk.bf16.gmra.mrb[56].mxu0 %vm339_vm1, %v3928_v42 }
 0x192   : > { %3122 = vmatmul.mubr.msk.bf16.gmra.mrb[56].mxu1 %vm452_vm2, %v3868_v14  ;;  %2424 = vmatprep.mubr.bf16.mxu0 %v3569_v0 }
 0x193   : > { %2647 = vmatprep.mubr.bf16.mxu1 %v3569_v0 }
 0x194   : > { %v1168_v63 = vpop.f32.mrb[16].mxu0 }
 0x195   : > { %v1223_v22 = vadd.f32 %v1168_v63, %v4119_v27  ;;  %v1170_v12 = vpop.f32.mrb[17].mxu0 }
 0x196   : > { %v1224_v39 = vadd.f32 %v1170_v12, %v4119_v27  ;;  %v1172_v48 = vpop.f32.mrb[18].mxu0 }
 0x197   : > { %2901 = vst [vmem:[%s4135_s24 + $0x100] sm:$0xff] %v1223_v22  ;;  %v1225_v49 = vadd.f32 %v1172_v48, %v4127_v29  ;;  %v1174_v42 = vpop.f32.mrb[19].mxu0 }
 0x198   : > { %2902 = vst [vmem:[%s4135_s24 + $0x108] sm:$0xff] %v1224_v39  ;;  %v1226_v14 = vadd.f32 %v1174_v42, %v4127_v29 }
 0x199   : > { %2903 = vst [vmem:[%s4135_s24 + $0x110] sm:$0xff] %v1225_v49  ;;  %3084 = vmatmul.mubr.msk.bf16.gmra.mrb[60].mxu0 %vm339_vm1, %v3939_v43 }
 0x19a   : > { %2904 = vst [vmem:[%s4135_s24 + $0x118] sm:$0xff] %v1226_v14  ;;  %3123 = vmatmul.mubr.msk.bf16.gmra.mrb[60].mxu1 %vm452_vm2, %v3879_v15 }
 0x19c   : > { %v1178_v0 = vpop.f32.mrb[20].mxu0 }
 0x19d   : > { %v1227_v53 = vadd.f32 %v1178_v0, %v4131_v34  ;;  %v1180_v50 = vpop.f32.mrb[21].mxu0 }
 0x19e   : > { %v1228_v51 = vadd.f32 %v1180_v50, %v4131_v34  ;;  %v1182_v52 = vpop.f32.mrb[22].mxu0 }
 0x19f   : > { %2905 = vst [vmem:[%s4135_s24 + $0x120] sm:$0xff] %v1227_v53  ;;  %v1229_v55 = vadd.f32 %v1182_v52, %v4152_v46  ;;  %v1184_v56 = vpop.f32.mrb[23].mxu0 }
 0x1a0   : > { %2906 = vst [vmem:[%s4135_s24 + $0x128] sm:$0xff] %v1228_v51  ;;  %v1230_v43 = vadd.f32 %v1184_v56, %v4152_v46 }
 0x1a1   : > { %2907 = vst [vmem:[%s4135_s24 + $0x130] sm:$0xff] %v1229_v55 }
 0x1a2   : > { %2908 = vst [vmem:[%s4135_s24 + $0x138] sm:$0xff] %v1230_v43 }
 0x1a4   : > { %v1188_v15 = vpop.f32.mrb[24].mxu0 }
 0x1a5   : > { %v1231_v57 = vadd.f32 %v1188_v15, %v4175_v7  ;;  %v1190_v58 = vpop.f32.mrb[25].mxu0 }
 0x1a6   : > { %v1232_v59 = vadd.f32 %v1190_v58, %v4175_v7  ;;  %v1192_v60 = vpop.f32.mrb[26].mxu0 }
 0x1a7   : > { %2909 = vst [vmem:[%s4135_s24 + $0x140] sm:$0xff] %v1231_v57  ;;  %v1233_v54 = vadd.f32 %v1192_v60, %v4178_v13  ;;  %v1194_v61 = vpop.f32.mrb[27].mxu0 }
 0x1a8   : > { %2910 = vst [vmem:[%s4135_s24 + $0x148] sm:$0xff] %v1232_v59  ;;  %v1234_v62 = vadd.f32 %v1194_v61, %v4178_v13 }
 0x1a9   : > { %2911 = vst [vmem:[%s4135_s24 + $0x150] sm:$0xff] %v1233_v54 }
 0x1aa   : > { %2912 = vst [vmem:[%s4135_s24 + $0x158] sm:$0xff] %v1234_v62 }
 0x1ac   : > { %v1198_v1 = vpop.f32.mrb[28].mxu0 }
 0x1ad   : > { %v1235_v2 = vadd.f32 %v1198_v1, %v4196_v30  ;;  %v1200_v3 = vpop.f32.mrb[29].mxu0 }
 0x1ae   : > { %v1236_v4 = vadd.f32 %v1200_v3, %v4196_v30  ;;  %v1202_v5 = vpop.f32.mrb[30].mxu0 }
 0x1af   : > { %2913 = vst [vmem:[%s4135_s24 + $0x160] sm:$0xff] %v1235_v2  ;;  %v1237_v6 = vadd.f32 %v1202_v5, %v4200_v32  ;;  %v1204_v8 = vpop.f32.mrb[31].mxu0 }
 0x1b0   : > { %2914 = vst [vmem:[%s4135_s24 + $0x168] sm:$0xff] %v1236_v4  ;;  %v1238_v10 = vadd.f32 %v1204_v8, %v4200_v32 }
 0x1b1   : > { %2915 = vst [vmem:[%s4135_s24 + $0x170] sm:$0xff] %v1237_v6 }
 0x1b2   : > { %2916 = vst [vmem:[%s4135_s24 + $0x178] sm:$0xff] %v1238_v10 }
 0x1b5   : > { %v1475_v11 = vpop.f32.mrb[16].mxu1 }
 0x1b6   : > { %v1530_v9 = vadd.f32 %v1475_v11, %v4119_v27  ;;  %v1477_v16 = vpop.f32.mrb[17].mxu1 }
 0x1b7   : > { %v1531_v17 = vadd.f32 %v1477_v16, %v4119_v27  ;;  %v1479_v18 = vpop.f32.mrb[18].mxu1 }
 0x1b8   : > { %2947 = vst [vmem:[%s4135_s24 + $0x180] sm:$0xff] %v1530_v9  ;;  %v1532_v19 = vadd.f32 %v1479_v18, %v4127_v29  ;;  %v1481_v20 = vpop.f32.mrb[19].mxu1 }
 0x1b9   : > { %2948 = vst [vmem:[%s4135_s24 + $0x188] sm:$0xff] %v1531_v17  ;;  %v1533_v21 = vadd.f32 %v1481_v20, %v4127_v29 }
 0x1ba   : > { %2949 = vst [vmem:[%s4135_s24 + $0x190] sm:$0xff] %v1532_v19 }
 0x1bb   : > { %2950 = vst [vmem:[%s4135_s24 + $0x198] sm:$0xff] %v1533_v21 }
 0x1bd   : > { %v1485_v23 = vpop.f32.mrb[20].mxu1 }
 0x1be   : > { %v1534_v24 = vadd.f32 %v1485_v23, %v4131_v34  ;;  %v1487_v25 = vpop.f32.mrb[21].mxu1 }
 0x1bf   : > { %v1535_v26 = vadd.f32 %v1487_v25, %v4131_v34  ;;  %v1489_v28 = vpop.f32.mrb[22].mxu1 }
 0x1c0   : > { %2951 = vst [vmem:[%s4135_s24 + $0x1a0] sm:$0xff] %v1534_v24  ;;  %v1536_v31 = vadd.f32 %v1489_v28, %v4152_v46  ;;  %v1491_v35 = vpop.f32.mrb[23].mxu1 }
 0x1c1   : > { %2952 = vst [vmem:[%s4135_s24 + $0x1a8] sm:$0xff] %v1535_v26  ;;  %v1537_v33 = vadd.f32 %v1491_v35, %v4152_v46 }
 0x1c2   : > { %2953 = vst [vmem:[%s4135_s24 + $0x1b0] sm:$0xff] %v1536_v31 }
 0x1c3   : > { %2954 = vst [vmem:[%s4135_s24 + $0x1b8] sm:$0xff] %v1537_v33 }
 0x1c5   : > { %v1495_v36 = vpop.f32.mrb[24].mxu1 }
 0x1c6   : > { %v1538_v37 = vadd.f32 %v1495_v36, %v4175_v7  ;;  %v1497_v38 = vpop.f32.mrb[25].mxu1 }
 0x1c7   : > { %v1539_v40 = vadd.f32 %v1497_v38, %v4175_v7  ;;  %v1499_v41 = vpop.f32.mrb[26].mxu1 }
 0x1c8   : > { %2955 = vst [vmem:[%s4135_s24 + $0x1c0] sm:$0xff] %v1538_v37  ;;  %v1540_v44 = vadd.f32 %v1499_v41, %v4178_v13  ;;  %v1501_v45 = vpop.f32.mrb[27].mxu1 }
 0x1c9   : > { %2956 = vst [vmem:[%s4135_s24 + $0x1c8] sm:$0xff] %v1539_v40  ;;  %v1541_v47 = vadd.f32 %v1501_v45, %v4178_v13 }
 0x1ca   : > { %2957 = vst [vmem:[%s4135_s24 + $0x1d0] sm:$0xff] %v1540_v44 }
 0x1cb   : > { %2958 = vst [vmem:[%s4135_s24 + $0x1d8] sm:$0xff] %v1541_v47 }
 0x1cd   : > { %v1505_v63 = vpop.f32.mrb[28].mxu1 }
 0x1ce   : > { %v1542_v22 = vadd.f32 %v1505_v63, %v4196_v30  ;;  %v1507_v12 = vpop.f32.mrb[29].mxu1 }
 0x1cf   : > { %v1543_v39 = vadd.f32 %v1507_v12, %v4196_v30  ;;  %v1509_v48 = vpop.f32.mrb[30].mxu1 }
 0x1d0   : > { %2959 = vst [vmem:[%s4135_s24 + $0x1e0] sm:$0xff] %v1542_v22  ;;  %v1544_v49 = vadd.f32 %v1509_v48, %v4200_v32  ;;  %v1511_v42 = vpop.f32.mrb[31].mxu1 }
 0x1d1   : > { %2960 = vst [vmem:[%s4135_s24 + $0x1e8] sm:$0xff] %v1543_v39  ;;  %v1545_v14 = vadd.f32 %v1511_v42, %v4200_v32 }
 0x1d2   : > { %2961 = vst [vmem:[%s4135_s24 + $0x1f0] sm:$0xff] %v1544_v49 }
 0x1d3   : > { %2962 = vst [vmem:[%s4135_s24 + $0x1f8] sm:$0xff] %v1545_v14 }
 0x1f4   : > { %v1782_v0 = vpop.f32.mrb[32].mxu0 }
 0x1f5   : > { %v1837_v53 = vadd.f32 %v1782_v0, %v4119_v27  ;;  %v1784_v50 = vpop.f32.mrb[33].mxu0 }
 0x1f6   : > { %v1838_v51 = vadd.f32 %v1784_v50, %v4119_v27  ;;  %v1786_v52 = vpop.f32.mrb[34].mxu0 }
 0x1f7   : > { %2993 = vst [vmem:[%s4135_s24 + $0x200] sm:$0xff] %v1837_v53  ;;  %v1839_v55 = vadd.f32 %v1786_v52, %v4127_v29  ;;  %v1788_v56 = vpop.f32.mrb[35].mxu0 }
 0x1f8   : > { %2994 = vst [vmem:[%s4135_s24 + $0x208] sm:$0xff] %v1838_v51  ;;  %v1840_v43 = vadd.f32 %v1788_v56, %v4127_v29 }
 0x1f9   : > { %2995 = vst [vmem:[%s4135_s24 + $0x210] sm:$0xff] %v1839_v55 }
 0x1fa   : > { %2996 = vst [vmem:[%s4135_s24 + $0x218] sm:$0xff] %v1840_v43 }
 0x1fc   : > { %v1792_v15 = vpop.f32.mrb[36].mxu0 }
 0x1fd   : > { %v1841_v57 = vadd.f32 %v1792_v15, %v4131_v34  ;;  %v1794_v58 = vpop.f32.mrb[37].mxu0 }
 0x1fe   : > { %v1842_v59 = vadd.f32 %v1794_v58, %v4131_v34  ;;  %v1796_v60 = vpop.f32.mrb[38].mxu0 }
 0x1ff   : > { %2997 = vst [vmem:[%s4135_s24 + $0x220] sm:$0xff] %v1841_v57  ;;  %v1843_v54 = vadd.f32 %v1796_v60, %v4152_v46  ;;  %v1798_v61 = vpop.f32.mrb[39].mxu0 }
 0x200   : > { %2998 = vst [vmem:[%s4135_s24 + $0x228] sm:$0xff] %v1842_v59  ;;  %v1844_v62 = vadd.f32 %v1798_v61, %v4152_v46 }
 0x201   : > { %2999 = vst [vmem:[%s4135_s24 + $0x230] sm:$0xff] %v1843_v54 }
 0x202   : > { %3000 = vst [vmem:[%s4135_s24 + $0x238] sm:$0xff] %v1844_v62 }
 0x204   : > { %v1802_v1 = vpop.f32.mrb[40].mxu0 }
 0x205   : > { %v1845_v2 = vadd.f32 %v1802_v1, %v4175_v7  ;;  %v1804_v3 = vpop.f32.mrb[41].mxu0 }
 0x206   : > { %v1846_v4 = vadd.f32 %v1804_v3, %v4175_v7  ;;  %v1806_v5 = vpop.f32.mrb[42].mxu0 }
 0x207   : > { %3001 = vst [vmem:[%s4135_s24 + $0x240] sm:$0xff] %v1845_v2  ;;  %v1847_v6 = vadd.f32 %v1806_v5, %v4178_v13  ;;  %v1808_v8 = vpop.f32.mrb[43].mxu0 }
 0x208   : > { %3002 = vst [vmem:[%s4135_s24 + $0x248] sm:$0xff] %v1846_v4  ;;  %v1848_v10 = vadd.f32 %v1808_v8, %v4178_v13 }
 0x209   : > { %3003 = vst [vmem:[%s4135_s24 + $0x250] sm:$0xff] %v1847_v6 }
 0x20a   : > { %3004 = vst [vmem:[%s4135_s24 + $0x258] sm:$0xff] %v1848_v10 }
 0x20c   : > { %v1812_v11 = vpop.f32.mrb[44].mxu0 }
 0x20d   : > { %v1849_v9 = vadd.f32 %v1812_v11, %v4196_v30  ;;  %v1814_v16 = vpop.f32.mrb[45].mxu0 }
 0x20e   : > { %v1850_v17 = vadd.f32 %v1814_v16, %v4196_v30  ;;  %v1816_v18 = vpop.f32.mrb[46].mxu0 }
 0x20f   : > { %3005 = vst [vmem:[%s4135_s24 + $0x260] sm:$0xff] %v1849_v9  ;;  %v1851_v19 = vadd.f32 %v1816_v18, %v4200_v32  ;;  %v1818_v20 = vpop.f32.mrb[47].mxu0 }
 0x210   : > { %3006 = vst [vmem:[%s4135_s24 + $0x268] sm:$0xff] %v1850_v17  ;;  %v1852_v21 = vadd.f32 %v1818_v20, %v4200_v32 }
 0x211   : > { %3007 = vst [vmem:[%s4135_s24 + $0x270] sm:$0xff] %v1851_v19 }
 0x212   : > { %3008 = vst [vmem:[%s4135_s24 + $0x278] sm:$0xff] %v1852_v21 }
 0x215   : > { %v2089_v23 = vpop.f32.mrb[32].mxu1 }
 0x216   : > { %v2144_v24 = vadd.f32 %v2089_v23, %v4119_v27  ;;  %v2091_v25 = vpop.f32.mrb[33].mxu1 }
 0x217   : > { %v2145_v26 = vadd.f32 %v2091_v25, %v4119_v27  ;;  %v2093_v28 = vpop.f32.mrb[34].mxu1 }
 0x218   : > { %3039 = vst [vmem:[%s4135_s24 + $0x280] sm:$0xff] %v2144_v24  ;;  %v2146_v31 = vadd.f32 %v2093_v28, %v4127_v29  ;;  %v2095_v35 = vpop.f32.mrb[35].mxu1 }
 0x219   : > { %3040 = vst [vmem:[%s4135_s24 + $0x288] sm:$0xff] %v2145_v26  ;;  %v2147_v33 = vadd.f32 %v2095_v35, %v4127_v29 }
 0x21a   : > { %3041 = vst [vmem:[%s4135_s24 + $0x290] sm:$0xff] %v2146_v31 }
 0x21b   : > { %3042 = vst [vmem:[%s4135_s24 + $0x298] sm:$0xff] %v2147_v33 }
 0x21d   : > { %v2099_v36 = vpop.f32.mrb[36].mxu1 }
 0x21e   : > { %v2148_v37 = vadd.f32 %v2099_v36, %v4131_v34  ;;  %v2101_v38 = vpop.f32.mrb[37].mxu1 }
 0x21f   : > { %v2149_v40 = vadd.f32 %v2101_v38, %v4131_v34  ;;  %v2103_v41 = vpop.f32.mrb[38].mxu1 }
 0x220   : > { %3043 = vst [vmem:[%s4135_s24 + $0x2a0] sm:$0xff] %v2148_v37  ;;  %v2150_v44 = vadd.f32 %v2103_v41, %v4152_v46  ;;  %v2105_v45 = vpop.f32.mrb[39].mxu1 }
 0x221   : > { %3044 = vst [vmem:[%s4135_s24 + $0x2a8] sm:$0xff] %v2149_v40  ;;  %v2151_v47 = vadd.f32 %v2105_v45, %v4152_v46 }
 0x222   : > { %3045 = vst [vmem:[%s4135_s24 + $0x2b0] sm:$0xff] %v2150_v44 }
 0x223   : > { %3046 = vst [vmem:[%s4135_s24 + $0x2b8] sm:$0xff] %v2151_v47 }
 0x225   : > { %v2109_v63 = vpop.f32.mrb[40].mxu1 }
 0x226   : > { %v2152_v22 = vadd.f32 %v2109_v63, %v4175_v7  ;;  %v2111_v12 = vpop.f32.mrb[41].mxu1 }
 0x227   : > { %v2153_v39 = vadd.f32 %v2111_v12, %v4175_v7  ;;  %v2113_v48 = vpop.f32.mrb[42].mxu1 }
 0x228   : > { %3047 = vst [vmem:[%s4135_s24 + $0x2c0] sm:$0xff] %v2152_v22  ;;  %v2154_v49 = vadd.f32 %v2113_v48, %v4178_v13  ;;  %v2115_v42 = vpop.f32.mrb[43].mxu1 }
 0x229   : > { %3048 = vst [vmem:[%s4135_s24 + $0x2c8] sm:$0xff] %v2153_v39  ;;  %v2155_v14 = vadd.f32 %v2115_v42, %v4178_v13 }
 0x22a   : > { %3049 = vst [vmem:[%s4135_s24 + $0x2d0] sm:$0xff] %v2154_v49 }
 0x22b   : > { %3050 = vst [vmem:[%s4135_s24 + $0x2d8] sm:$0xff] %v2155_v14 }
 0x22d   : > { %v2119_v0 = vpop.f32.mrb[44].mxu1 }
 0x22e   : > { %v2156_v53 = vadd.f32 %v2119_v0, %v4196_v30  ;;  %v2121_v50 = vpop.f32.mrb[45].mxu1 }
 0x22f   : > { %v2157_v51 = vadd.f32 %v2121_v50, %v4196_v30  ;;  %v2123_v52 = vpop.f32.mrb[46].mxu1 }
 0x230   : > { %3051 = vst [vmem:[%s4135_s24 + $0x2e0] sm:$0xff] %v2156_v53  ;;  %v2158_v55 = vadd.f32 %v2123_v52, %v4200_v32  ;;  %v2125_v56 = vpop.f32.mrb[47].mxu1 }
 0x231   : > { %3052 = vst [vmem:[%s4135_s24 + $0x2e8] sm:$0xff] %v2157_v51  ;;  %v2159_v43 = vadd.f32 %v2125_v56, %v4200_v32 }
 0x232   : > { %3053 = vst [vmem:[%s4135_s24 + $0x2f0] sm:$0xff] %v2158_v55 }
 0x233   : > { %3054 = vst [vmem:[%s4135_s24 + $0x2f8] sm:$0xff] %v2159_v43 }
 0x254   : > { %v2396_v15 = vpop.f32.mrb[48].mxu0 }
 0x255   : > { %v2451_v57 = vadd.f32 %v2396_v15, %v4119_v27  ;;  %v2619_v58 = vpop.f32.mrb[48].mxu1  ;;  %v2398_v59 = vpop.f32.mrb[49].mxu0 }
 0x256   : > { %v2658_v60 = vadd.f32 %v2619_v58, %v4119_v27  ;;  %v2452_v54 = vadd.f32 %v2398_v59, %v4119_v27  ;;  %v2621_v61 = vpop.f32.mrb[49].mxu1  ;;  %v2400_v62 = vpop.f32.mrb[50].mxu0 }
 0x257   : > { %3085 = vst [vmem:[%s4135_s24 + $0x300] sm:$0xff] %v2451_v57  ;;  %v2659_v1 = vadd.f32 %v2621_v61, %v4119_v27  ;;  %v2453_v2 = vadd.f32 %v2400_v62, %v4127_v29  ;;  %v2623_v3 = vpop.f32.mrb[50].mxu1  ;;  %v2402_v4 = vpop.f32.mrb[51].mxu0 }
 0x258   : > { %3124 = vst [vmem:[%s4135_s24 + $0x380] sm:$0xff] %v2658_v60  ;;  %3086 = vst [vmem:[%s4135_s24 + $0x308] sm:$0xff] %v2452_v54  ;;  %v2660_v5 = vadd.f32 %v2623_v3, %v4127_v29  ;;  %v2454_v6 = vadd.f32 %v2402_v4, %v4127_v29  ;;  %v2625_v8 = vpop.f32.mrb[51].mxu1 }
 0x259   : > { %3125 = vst [vmem:[%s4135_s24 + $0x388] sm:$0xff] %v2659_v1  ;;  %3087 = vst [vmem:[%s4135_s24 + $0x310] sm:$0xff] %v2453_v2  ;;  %v2661_v10 = vadd.f32 %v2625_v8, %v4127_v29 }
 0x25a   : > { %3126 = vst [vmem:[%s4135_s24 + $0x390] sm:$0xff] %v2660_v5  ;;  %3088 = vst [vmem:[%s4135_s24 + $0x318] sm:$0xff] %v2454_v6 }
 0x25b   : > { %3127 = vst [vmem:[%s4135_s24 + $0x398] sm:$0xff] %v2661_v10 }
 0x25c   : > { %v2406_v27 = vpop.f32.mrb[52].mxu0 }
 0x25d   : > { %v2455_v11 = vadd.f32 %v2406_v27, %v4131_v34  ;;  %v2629_v9 = vpop.f32.mrb[52].mxu1  ;;  %v2408_v16 = vpop.f32.mrb[53].mxu0 }
 0x25e   : > { %v2662_v17 = vadd.f32 %v2629_v9, %v4131_v34  ;;  %v2456_v18 = vadd.f32 %v2408_v16, %v4131_v34  ;;  %v2631_v19 = vpop.f32.mrb[53].mxu1  ;;  %v2410_v29 = vpop.f32.mrb[54].mxu0 }
 0x25f   : > { %3089 = vst [vmem:[%s4135_s24 + $0x320] sm:$0xff] %v2455_v11  ;;  %v2663_v20 = vadd.f32 %v2631_v19, %v4131_v34  ;;  %v2457_v21 = vadd.f32 %v2410_v29, %v4152_v46  ;;  %v2633_v23 = vpop.f32.mrb[54].mxu1  ;;  %v2412_v24 = vpop.f32.mrb[55].mxu0 }
 0x260   : > { %3128 = vst [vmem:[%s4135_s24 + $0x3a0] sm:$0xff] %v2662_v17  ;;  %3090 = vst [vmem:[%s4135_s24 + $0x328] sm:$0xff] %v2456_v18  ;;  %v2664_v25 = vadd.f32 %v2633_v23, %v4152_v46  ;;  %v2458_v26 = vadd.f32 %v2412_v24, %v4152_v46  ;;  %v2635_v28 = vpop.f32.mrb[55].mxu1 }
 0x261   : > { %3129 = vst [vmem:[%s4135_s24 + $0x3a8] sm:$0xff] %v2663_v20  ;;  %3091 = vst [vmem:[%s4135_s24 + $0x330] sm:$0xff] %v2457_v21  ;;  %v2665_v31 = vadd.f32 %v2635_v28, %v4152_v46 }
 0x262   : > { %3130 = vst [vmem:[%s4135_s24 + $0x3b0] sm:$0xff] %v2664_v25  ;;  %3092 = vst [vmem:[%s4135_s24 + $0x338] sm:$0xff] %v2458_v26 }
 0x263   : > { %3131 = vst [vmem:[%s4135_s24 + $0x3b8] sm:$0xff] %v2665_v31 }
 0x264   : > { %v2416_v34 = vpop.f32.mrb[56].mxu0 }
 0x265   : > { %v2459_v35 = vadd.f32 %v2416_v34, %v4175_v7  ;;  %v2639_v33 = vpop.f32.mrb[56].mxu1  ;;  %v2418_v36 = vpop.f32.mrb[57].mxu0 }
 0x266   : > { %v2666_v37 = vadd.f32 %v2639_v33, %v4175_v7  ;;  %v2460_v38 = vadd.f32 %v2418_v36, %v4175_v7  ;;  %v2641_v40 = vpop.f32.mrb[57].mxu1  ;;  %v2420_v46 = vpop.f32.mrb[58].mxu0 }
 0x267   : > { %3093 = vst [vmem:[%s4135_s24 + $0x340] sm:$0xff] %v2459_v35  ;;  %v2667_v41 = vadd.f32 %v2641_v40, %v4175_v7  ;;  %v2461_v44 = vadd.f32 %v2420_v46, %v4178_v13  ;;  %v2643_v45 = vpop.f32.mrb[58].mxu1  ;;  %v2422_v47 = vpop.f32.mrb[59].mxu0 }
 0x268   : > { %3132 = vst [vmem:[%s4135_s24 + $0x3c0] sm:$0xff] %v2666_v37  ;;  %3094 = vst [vmem:[%s4135_s24 + $0x348] sm:$0xff] %v2460_v38  ;;  %v2668_v63 = vadd.f32 %v2643_v45, %v4178_v13  ;;  %v2462_v22 = vadd.f32 %v2422_v47, %v4178_v13  ;;  %v2645_v12 = vpop.f32.mrb[59].mxu1 }
 0x269   : > { %3133 = vst [vmem:[%s4135_s24 + $0x3c8] sm:$0xff] %v2667_v41  ;;  %3095 = vst [vmem:[%s4135_s24 + $0x350] sm:$0xff] %v2461_v44  ;;  %v2669_v39 = vadd.f32 %v2645_v12, %v4178_v13 }
 0x26a   : > { %3134 = vst [vmem:[%s4135_s24 + $0x3d0] sm:$0xff] %v2668_v63  ;;  %3096 = vst [vmem:[%s4135_s24 + $0x358] sm:$0xff] %v2462_v22 }
 0x26b   : > { %3135 = vst [vmem:[%s4135_s24 + $0x3d8] sm:$0xff] %v2669_v39 }
 0x26c   : > { %v2426_v7 = vpop.f32.mrb[60].mxu0 }
 0x26d   : > { %v2463_v48 = vadd.f32 %v2426_v7, %v4196_v30  ;;  %v2649_v49 = vpop.f32.mrb[60].mxu1  ;;  %v2428_v42 = vpop.f32.mrb[61].mxu0 }
 0x26e   : > { %v2670_v14 = vadd.f32 %v2649_v49, %v4196_v30  ;;  %v2464_v0 = vadd.f32 %v2428_v42, %v4196_v30  ;;  %v2651_v53 = vpop.f32.mrb[61].mxu1  ;;  %v2430_v13 = vpop.f32.mrb[62].mxu0 }
 0x26f   : > { %3097 = vst [vmem:[%s4135_s24 + $0x360] sm:$0xff] %v2463_v48  ;;  %v2671_v50 = vadd.f32 %v2651_v53, %v4196_v30  ;;  %v2465_v51 = vadd.f32 %v2430_v13, %v4200_v32  ;;  %v2653_v52 = vpop.f32.mrb[62].mxu1  ;;  %v2432_v55 = vpop.f32.mrb[63].mxu0 }
 0x270   : > { %3136 = vst [vmem:[%s4135_s24 + $0x3e0] sm:$0xff] %v2670_v14  ;;  %3098 = vst [vmem:[%s4135_s24 + $0x368] sm:$0xff] %v2464_v0  ;;  %v2672_v56 = vadd.f32 %v2653_v52, %v4200_v32  ;;  %v2466_v43 = vadd.f32 %v2432_v55, %v4200_v32  ;;  %v2655_v15 = vpop.f32.mrb[63].mxu1 }
 0x271   : > { %3137 = vst [vmem:[%s4135_s24 + $0x3e8] sm:$0xff] %v2671_v50  ;;  %3099 = vst [vmem:[%s4135_s24 + $0x370] sm:$0xff] %v2465_v51  ;;  %v2673_v30 = vadd.f32 %v2655_v15, %v4200_v32 }
 0x272   : > { %3138 = vst [vmem:[%s4135_s24 + $0x3f0] sm:$0xff] %v2672_v56  ;;  %3100 = vst [vmem:[%s4135_s24 + $0x378] sm:$0xff] %v2466_v43 }
 0x273   : > { %3139 = vst [vmem:[%s4135_s24 + $0x3f8] sm:$0xff] %v2673_v30 }
 0x274   : > { %3495 = shalt.err (!%p3492_p5)
}
 0x275   : > { %s3496_s30 = scalar_lea.hbm %s4504_s12, 16384  ;;  %s3500_s17 = scalar_lea.hbm %s4566_s5, 32768 }
 0x276   : > { %p3497_p4 = scmp.ne.s32.totalorder %s4504_s12, %s3496_s30  ;;  %p3501_p12 = scmp.lt.u32.totalorder %s4504_s12, %s4566_s5 }
 0x277   : > { %p3502_p1 = scmp.lt.u32.totalorder %s3500_s17, %s3496_s30  ;;  %p3504_p8 = scmp.lt.u32.totalorder %s3496_s30, %s4504_s12 }
 0x278   : > { %p3498_p7 = pnand %p3497_p4, %p4574_p9 }
 0x279   : > { %p3503_p3 = por %p3502_p1, %p3501_p12 }
 0x27a   : > { %p3499_p10 = pneg %p3498_p7 }
 0x27b   : > { %p3505_p11 = por %p3504_p8, %p3503_p3 }
 0x27d   : > { %p3506_p0 = pnand %p3505_p11, %p3499_p10 }
 0x27f   : > { %3509 = shalt.err (!%p3506_p0)
}
 0x280   : > { %s3571_s21 = smov 256   ;;  %s3572_s9 = smov 16  }
 0x281   : > { %3373 = dma.vmem_to_hbm [thread:$0]  (%p4574_p9), %s4506_s11, 16384, %s4504_s12, %s2692_s13, %s3571_s21, %s3571_s21, %s3572_s9  }
 0x282 PF: > { %s2722_s15 = sand.u32 1, %s3544_s18   ;;  %p4575_p6 = scmp.ne.s32.totalorder %s4571_s8, 0 }
 0x283   : > { %p4576_p13 = scmp.ge.s32.totalorder %s3564_s23, 2  ;;  %s2723_s25 = scalar_lea.sflag [#allocation4], %s2722_s15 }
 0x285   : > { %p3380_p2 = pnand %p4576_p13, %p4575_p6 }
 0x287   : > { %3539 = dma.done.wait (!%p3380_p2), %s2723_s25, 16384  }
 0x288   : > { %3541 = vsyncadd (!%p3380_p2), %s2723_s25, 4294950912  ;;  %s21_s23 = sadd.s32 1, %s3564_s23   ;;  %s4577_s18 = smov %s3548_s19 }
 0x289   : > { %p18_p5 = scmp.ge.s32.totalorder %s21_s23, 4   ;;  %s4578_s19 = smov %s3552_s20 }
 0x28a   : > { %s4579_s20 = smov %s3659_s7  ;;  %s4580_s21 = smov %s3560_s22 }
 0x28b   : > { %s4581_s22 = smov %s4583_s26  ;;  %20 = sbr.rel (!%p18_p5) target bundleno = 6 (0x6), region = 99 }
 0x292   :  { %2728 = vsyncpa [#allocation3], 1 }
 0x293   :  { %2730 = vsyncpa [#allocation3 + $0x1], 1 }
 0x294   :  { %2731 = vsyncpa [#allocation4], 1 }
 0x295   :  { %2733 = vsyncpa [#allocation4 + $0x1], 1 }

</bundles_post_ra>
